<compile_context>
chip_gen: v7x
topology: tpu7x:2x2x1
jax: 0.10.0
libtpu: 0.0.40
codegen_flags: <defaults>
</compile_context>

<pallas_src>
import functools

import jax
import jax.numpy as jnp
from jax.experimental import pallas as pl
from jax.experimental.pallas import tpu as pltpu


# ------------------------------ TPU budgets ------------------------------

def _derive_vmem_limit():
    # ~3/4 of physical VMEM, capped at 96 MiB: v5e/v6e (128 MiB) -> 96 MiB,
    # v7x (64 MiB) -> 48 MiB.  Falls back to a safe default if the query fails.
    try:
        info = pltpu.get_tpu_info()
        phys = int(getattr(info, "vmem_capacity_bytes"))
    except Exception:
        phys = 64 * 1024 * 1024
    return int(min(phys * 3 // 4, 96 * 1024 * 1024))


_VMEM_LIMIT = _derive_vmem_limit()
_ROW_TILE = 2048          # packed rows per grid step (2048-8192 original rows)


def _mosaic_params(semantics=("parallel",)):
    return pltpu.CompilerParams(dimension_semantics=semantics,
                                vmem_limit_bytes=_VMEM_LIMIT)


def _row_tile(m):
    return m if m <= _ROW_TILE else _ROW_TILE


def _pick_pack(m, n):
    """Rows packed per output row so the output lane width becomes p*n == 128."""
    if n >= 128 or 128 % n != 0:
        return 1
    p = 128 // n
    while p > 1 and m % p:
        p //= 2
    return p


def _block_diag(w, p):
    if p == 1:
        return w
    k, n = w.shape
    out = jnp.zeros((p * k, p * n), w.dtype)
    for g in range(p):
        out = out.at[g * k:(g + 1) * k, g * n:(g + 1) * n].set(w)
    return out


# ----------------------------- Pallas kernels -----------------------------

def _apply_act(y, act):
    if act == "relu":
        y = jnp.maximum(y, 0.0)
    elif act == "sigmoid":
        # stable sigmoid; exp + approximate reciprocal both run on the EUP.
        # (approx=True -> tiny relative error vs exact sigmoid; acceptable.)
        e = jnp.exp(-jnp.abs(y))
        r = pl.reciprocal(1.0 + e, approx=True)
        y = jnp.where(y >= 0, r, e * r)
    return y


def _matmul_kernel(x_ref, w_ref, o_ref, *, act):
    y = jnp.dot(x_ref[...], w_ref[...], preferred_element_type=jnp.float32)
    o_ref[...] = _apply_act(y, act).astype(o_ref.dtype)


def _resblock_kernel(xcol_ref, xskip_ref, w3_ref, w1_ref, o_ref):
    # fused: y = conv1x1(relu(conv3x3(x))) + x  (intermediate h stays in VMEM)
    h = jnp.dot(xcol_ref[...], w3_ref[...], preferred_element_type=jnp.float32)
    h = jnp.maximum(h, 0.0).astype(w1_ref.dtype)
    y = jnp.dot(h, w1_ref[...], preferred_element_type=jnp.float32)
    y = y + xskip_ref[...].astype(jnp.float32)
    o_ref[...] = y.astype(o_ref.dtype)


def _vq_kernel(z_ref, e_ref, e2_ref, q_ref, psum_ref, err_ref, *, n_total):
    i = pl.program_id(0)
    z_lo = z_ref[...]                              # (T, D) bf16
    z = z_lo.astype(jnp.float32)
    e = e_ref[...]                                 # (Kp, D) f32, padded rows = 0
    e2 = e2_ref[...]                               # (1, Kp) f32, padded = 1e30
    t, _ = z.shape
    kp = e.shape[0]

    # bf16 MXU for the big z.e product; f32 accumulate / argmin / error math.
    ze = jax.lax.dot_general(z_lo, e.astype(jnp.bfloat16),
                             (((1,), (1,)), ((), ())),
                             preferred_element_type=jnp.float32)   # (T, Kp)
    # argmin over ||z - e||^2  ==  argmin over (e^2 - 2 z.e)  (z^2 const/row)
    score = e2 - 2.0 * ze
    kiota = jax.lax.broadcasted_iota(jnp.int32, score.shape, 1)
    smin = jnp.min(score, axis=1, keepdims=True)
    # first index attaining the minimum (matches torch.argmin tie-break)
    idx = jnp.min(jnp.where(score <= smin, kiota, kp), axis=1, keepdims=True)
    onehot = (kiota == idx).astype(jnp.float32)                    # (T, Kp)

    q = jnp.dot(onehot, e, preferred_element_type=jnp.float32)     # (T, D)
    q_ref[...] = q.astype(q_ref.dtype)

    # mask rows past the true end of the flattened latents (partial last tile)
    row = i * t + jax.lax.broadcasted_iota(jnp.int32, (t, 1), 0)
    valid = row < n_total                                          # (T, 1)

    # per-tile partials (no cross-iteration accumulation -> "parallel" grid);
    # counts are replicated across 8 sublanes to keep the block (8,128)-shaped.
    part = jnp.sum(jnp.where(valid, onehot, 0.0), axis=0, keepdims=True)
    psum_ref[...] = (part * jnp.ones((8, 1), jnp.float32)).reshape(1, 8, kp)
    diff = jnp.where(valid, q - z, 0.0)
    err = jnp.sum(jnp.sum(diff * diff, axis=1, keepdims=True),
                  axis=0, keepdims=True)
    err_ref[...] = err.reshape(1, 1, 1)


# ----------------------------- Pallas wrappers -----------------------------

def pallas_matmul(x, w, act="none", out_dtype=jnp.bfloat16):
    m, k = x.shape
    k2, n = w.shape
    assert k == k2
    p = _pick_pack(m, n)
    xp = x.reshape(m // p, p * k) if p > 1 else x          # free row-major view
    wp = _block_diag(w, p) if p > 1 else w                 # (p*k, p*n) weights
    mp, kp_, np_ = xp.shape[0], xp.shape[1], wp.shape[1]
    tm = _row_tile(mp)
    grid = (pl.cdiv(mp, tm),)
    cost = pl.CostEstimate(
        flops=2 * mp * kp_ * np_,
        transcendentals=(mp * np_ if act == "sigmoid" else 0),
        bytes_accessed=(xp.size * xp.dtype.itemsize + wp.size * wp.dtype.itemsize
                        + mp * np_ * jnp.dtype(out_dtype).itemsize))
    yp = pl.pallas_call(
        functools.partial(_matmul_kernel, act=act),
        out_shape=jax.ShapeDtypeStruct((mp, np_), out_dtype),
        grid=grid,
        in_specs=[pl.BlockSpec((tm, kp_), lambda i: (i, 0)),
                  pl.BlockSpec((kp_, np_), lambda i: (0, 0))],   # weight resident
        out_specs=pl.BlockSpec((tm, np_), lambda i: (i, 0)),
        compiler_params=_mosaic_params(("parallel",)),
        cost_estimate=cost,
    )(xp, wp)
    return yp.reshape(m, n) if p > 1 else yp


def pallas_resblock(xcol_p, xskip_p, w3_bd, w1_bd, out_dtype=jnp.bfloat16):
    mp, k9p = xcol_p.shape
    cp = xskip_p.shape[1]
    tm = _row_tile(mp)
    grid = (pl.cdiv(mp, tm),)
    cost = pl.CostEstimate(
        flops=2 * mp * k9p * cp + 2 * mp * cp * cp,
        transcendentals=0,
        bytes_accessed=((xcol_p.size + xskip_p.size) * 2
                        + (w3_bd.size + w1_bd.size) * 2
                        + mp * cp * jnp.dtype(out_dtype).itemsize))
    return pl.pallas_call(
        _resblock_kernel,
        out_shape=jax.ShapeDtypeStruct((mp, cp), out_dtype),
        grid=grid,
        in_specs=[pl.BlockSpec((tm, k9p), lambda i: (i, 0)),
                  pl.BlockSpec((tm, cp), lambda i: (i, 0)),      # lane-dense skip
                  pl.BlockSpec((k9p, cp), lambda i: (0, 0)),     # weights resident
                  pl.BlockSpec((cp, cp), lambda i: (0, 0))],
        out_specs=pl.BlockSpec((tm, cp), lambda i: (i, 0)),
        compiler_params=_mosaic_params(("parallel",)),
        cost_estimate=cost,
    )(xcol_p, xskip_p, w3_bd, w1_bd)


def vq_quantize(z_flat, codebook):
    m, d = z_flat.shape
    k = codebook.shape[0]
    kp = max(128, ((k + 127) // 128) * 128)
    e_f32 = codebook.astype(jnp.float32)
    e_pad = jnp.pad(e_f32, ((0, kp - k), (0, 0)))                     # zeros pad
    e2 = jnp.sum(e_pad * e_pad, axis=1)
    # padded codebook lanes get a huge ||e||^2 so they can never win the argmin
    e2 = jnp.where(jnp.arange(kp) < k, e2, 1e30).reshape(1, kp)

    tm = _row_tile(m)
    grid_m = pl.cdiv(m, tm)
    cost = pl.CostEstimate(
        flops=2 * m * d * kp + 2 * m * kp * d, transcendentals=0,
        bytes_accessed=m * d * 2 + kp * d * 4 + kp * 4 + m * d * 4
        + grid_m * (8 * kp + 1) * 4)
    q, psum, err = pl.pallas_call(
        functools.partial(_vq_kernel, n_total=m),
        out_shape=(jax.ShapeDtypeStruct((m, d), jnp.float32),
                   jax.ShapeDtypeStruct((grid_m, 8, kp), jnp.float32),
                   jax.ShapeDtypeStruct((grid_m, 1, 1), jnp.float32)),
        grid=(grid_m,),
        in_specs=[pl.BlockSpec((tm, d), lambda i: (i, 0)),
                  pl.BlockSpec((kp, d), lambda i: (0, 0)),        # codebook resident
                  pl.BlockSpec((1, kp), lambda i: (0, 0))],       # ||e||^2 resident
        out_specs=(pl.BlockSpec((tm, d), lambda i: (i, 0)),
                   pl.BlockSpec((1, 8, kp), lambda i: (i, 0, 0)),  # per-tile partials
                   pl.BlockSpec((1, 1, 1), lambda i: (i, 0, 0))),
        compiler_params=_mosaic_params(("parallel",)),             # megacore-friendly
        cost_estimate=cost,
    )(z_flat.astype(jnp.bfloat16), e_pad, e2)
    counts = jnp.sum(psum[:, 0, :], axis=0)[:k]
    return q, counts, jnp.sum(err)


# ----------------------------- conv glue (JAX) -----------------------------

def im2col(x, kh, kw, stride, pad):
    # x: (N, H, W, C) -> (N*OH*OW, kh*kw*C), tap-major then channel.
    # TODO(synk): still materialized in HBM; in-kernel halo'd tap handling is
    # the remaining big lever for the conv path.
    if pad:
        x = jnp.pad(x, ((0, 0), (pad, pad), (pad, pad), (0, 0)))
    n, h, w, c = x.shape
    oh = (h - kh) // stride + 1
    ow = (w - kw) // stride + 1
    cols = []
    for i in range(kh):
        for j in range(kw):
            cols.append(x[:, i:i + stride * (oh - 1) + 1:stride,
                           j:j + stride * (ow - 1) + 1:stride, :])
    patches = jnp.stack(cols, axis=3)                 # (N, OH, OW, kh*kw, C)
    return patches.reshape(n * oh * ow, kh * kw * c), (n, oh, ow)


def conv2d(x, w_hwio, stride=1, pad=1, act="none", out_dtype=jnp.bfloat16):
    kh, kw, cin, cout = w_hwio.shape
    # cast BEFORE the patch expansion so the im2col matrix is bf16 in HBM
    xm, (n, oh, ow) = im2col(x.astype(jnp.bfloat16), kh, kw, stride, pad)
    wm = w_hwio.reshape(kh * kw * cin, cout).astype(jnp.bfloat16)
    y = pallas_matmul(xm, wm, act=act, out_dtype=out_dtype)
    return y.reshape(n, oh, ow, cout)


def residual_block(x, w3_hwio, w1_hwio, out_dtype=jnp.bfloat16):
    # out = x + conv1x1(relu(conv3x3(x)))  -- one fused, row-packed Pallas kernel
    n, h, w, c = x.shape
    xb = x.astype(jnp.bfloat16)
    xcol, _ = im2col(xb, 3, 3, 1, 1)
    m = n * h * w
    p = _pick_pack(m, c)
    xcol_p = xcol.reshape(m // p, p * 9 * c)          # free row-major view
    xskip_p = xb.reshape(m // p, p * c)               # lane-dense skip input
    w3_bd = _block_diag(w3_hwio.reshape(9 * c, c).astype(jnp.bfloat16), p)
    w1_bd = _block_diag(w1_hwio.reshape(c, c).astype(jnp.bfloat16), p)
    y = pallas_resblock(xcol_p, xskip_p, w3_bd, w1_bd, out_dtype=out_dtype)
    return y.reshape(n, h, w, c)


def conv_transpose2d_2x(x, w_hwio, act="none", out_dtype=jnp.bfloat16):
    # ConvTranspose2d(k=4, stride=2, pad=1) via the sub-pixel decomposition,
    # fused into ONE matmul: a 3x3/pad-1 im2col against a (9*Cin, 4*Cout)
    # weight whose taps outside each parity's 2x2 subset are zero, followed by
    # a pixel shuffle.  Weight flip is absorbed into our own parameterization.
    # TODO(synk): loading PyTorch-trained ConvTranspose2d weights would require
    # the flip / transpose.
    n, h, w, c = x.shape
    kh, kw, cin, cout = w_hwio.shape
    assert (kh, kw) == (4, 4) and cin == c
    wf = jnp.zeros((3, 3, cin, 4 * cout), jnp.float32)
    for a in (0, 1):
        for b in (0, 1):
            grp = 2 * a + b
            for di in (0, 1):
                for dj in (0, 1):
                    wf = wf.at[a + di, b + dj, :,
                               grp * cout:(grp + 1) * cout].set(
                                   w_hwio[a + 2 * di, b + 2 * dj])
    xcol, (nb, oh, ow) = im2col(x.astype(jnp.bfloat16), 3, 3, 1, 1)
    y = pallas_matmul(xcol, wf.reshape(9 * cin, 4 * cout).astype(jnp.bfloat16),
                      act=act, out_dtype=out_dtype)
    y = y.reshape(nb, oh, ow, 2, 2, cout)             # (..., a, b, Cout)
    y = y.transpose(0, 1, 3, 2, 4, 5).reshape(nb, 2 * oh, 2 * ow, cout)
    return y


# ----------------------------- model -----------------------------

def init_vqvae_params(key, img_channels, hidden, embedding_dim, num_embeddings,
                      num_down=2, nr_down=1, nr_bottle=2):
    keys = iter(jax.random.split(key, 128))

    def conv_w(cin, cout, k):
        fan_in = k * k * cin
        return jax.random.normal(next(keys), (k, k, cin, cout),
                                 jnp.float32) / jnp.sqrt(fan_in)

    enc_chs = [img_channels] + [hidden] * (num_down - 1) + [embedding_dim]
    encoder = {"down": [], "bottleneck": []}
    for i in range(num_down):
        cin, cout = enc_chs[i], enc_chs[i + 1]
        res = [{"w3": conv_w(cout, cout, 3), "w1": conv_w(cout, cout, 1)}
               for _ in range(nr_down)]
        encoder["down"].append({"conv": conv_w(cin, cout, 4), "res": res})
    encoder["bottleneck"] = [{"w3": conv_w(embedding_dim, embedding_dim, 3),
                              "w1": conv_w(embedding_dim, embedding_dim, 1)}
                             for _ in range(nr_bottle)]

    dec_chs = [embedding_dim] + [hidden] * (num_down - 1) + [img_channels]
    decoder = {"bottleneck": [{"w3": conv_w(embedding_dim, embedding_dim, 3),
                               "w1": conv_w(embedding_dim, embedding_dim, 1)}
                              for _ in range(nr_bottle)],
               "up": []}
    for i in range(num_down):
        cin, cout = dec_chs[i], dec_chs[i + 1]
        res = [{"w3": conv_w(cin, cin, 3), "w1": conv_w(cin, cin, 1)}
               for _ in range(nr_down)]
        decoder["up"].append({"conv": conv_w(cin, cout, 4), "res": res})

    codebook = jax.random.uniform(next(keys), (num_embeddings, embedding_dim),
                                  jnp.float32,
                                  -1.0 / num_embeddings, 1.0 / num_embeddings)
    return {"encoder": encoder, "decoder": decoder, "codebook": codebook}


def vqvae_forward(params, x, commitment_cost=0.25, sigmoid_activation=True):
    # ---- encode ----
    z = x
    for blk in params["encoder"]["down"]:
        z = conv2d(z, blk["conv"], stride=2, pad=1, act="relu")
        for rb in blk["res"]:
            z = residual_block(z, rb["w3"], rb["w1"])
    for rb in params["encoder"]["bottleneck"]:
        z = residual_block(z, rb["w3"], rb["w1"])      # stays bf16 into the VQ

    # ---- quantize (VectorQuantizer, decay == 0.0 path) ----
    n, h, w, d = z.shape
    nf = n * h * w
    z_flat = z.reshape(nf, d)
    q_flat, counts, sq_err = vq_quantize(z_flat, params["codebook"])

    mse = sq_err / (nf * d)
    # q_latent_loss + commitment_cost * e_latent_loss (identical forward values;
    # the detach() only changes gradients).  TODO(synk): forward-only; pallas
    # paths here have no autodiff rule for training.
    vq_loss = (1.0 + commitment_cost) * mse
    avg_probs = counts / nf
    perplexity = jnp.exp(-jnp.sum(avg_probs * jnp.log(avg_probs + 1e-10)))

    # straight-through estimator (forward value == quantized)
    zf = z_flat.astype(jnp.float32)
    q_st = zf + jax.lax.stop_gradient(q_flat - zf)
    quantized = q_st.reshape(n, h, w, d)

    # ---- decode ----
    y = quantized.astype(jnp.bfloat16)
    for rb in params["decoder"]["bottleneck"]:
        y = residual_block(y, rb["w3"], rb["w1"])
    ups = params["decoder"]["up"]
    for li, blk in enumerate(ups):
        for rb in blk["res"]:
            y = residual_block(y, rb["w3"], rb["w1"])
        last = li == len(ups) - 1
        act = ("sigmoid" if sigmoid_activation else "none") if last else "relu"
        y = conv_transpose2d_2x(y, blk["conv"], act=act,
                                out_dtype=jnp.float32 if last else jnp.bfloat16)

    return vq_loss, quantized, y, perplexity


# ----------------------------- demo -----------------------------

if __name__ == "__main__":
    key = jax.random.PRNGKey(0)
    key_params, key_x = jax.random.split(key)

    img_channels = 3
    embedding_dim = 32
    num_embeddings = 64
    params = init_vqvae_params(key_params, img_channels=img_channels, hidden=16,
                               embedding_dim=embedding_dim,
                               num_embeddings=num_embeddings)

    # NHWC input (PyTorch equivalent would be (2, 3, 16, 16) NCHW)
    x = jax.random.uniform(key_x, (2, 16, 16, img_channels), jnp.float32)

    fwd = jax.jit(functools.partial(vqvae_forward, commitment_cost=0.25))
    vq_loss, quantized, x_recon, perplexity = fwd(params, x)
    jax.block_until_ready((vq_loss, quantized, x_recon, perplexity))

    assert quantized.shape == (2, 4, 4, embedding_dim)
    assert x_recon.shape == x.shape
    assert bool(jnp.isfinite(vq_loss)) and bool(jnp.isfinite(perplexity))
    assert bool(jnp.all(jnp.isfinite(x_recon)))
    print("KERNEL_OK")
</pallas_src>

<mosaic_0001>
module attributes {stable_mosaic.version = 11 : i64} {
  func.func @_matmul_kernel(%arg0: i32, %arg1: memref<16x384xbf16, #tpu.memory_space<vmem>>, %arg2: memref<384x128xbf16, #tpu.memory_space<vmem>>, %arg3: memref<16x128xbf16, #tpu.memory_space<vmem>>) attributes {dimension_semantics = [#tpu.dimension_semantics<parallel>], iteration_bounds = array<i64: 1>, scalar_prefetch = 0 : i64, scratch_operands = 0 : i64, tpu.core_type = #tpu.core_type<tc>, window_params = [{transform_indices = @transform_0, window_bounds = array<i64: 16, 384>}, {pipeline_mode = #tpu.pipeline_mode<synchronous>, transform_indices = @transform_1, window_bounds = array<i64: 384, 128>}, {transform_indices = @transform_2, window_bounds = array<i64: 16, 128>}]} {
    %c0 = arith.constant 0 : index
    %c0_0 = arith.constant 0 : index
    %0 = vector.load %arg1[%c0, %c0_0] : memref<16x384xbf16, #tpu.memory_space<vmem>>, vector<16x384xbf16>
    %c0_1 = arith.constant 0 : index
    %c0_2 = arith.constant 0 : index
    %1 = vector.load %arg2[%c0_1, %c0_2] : memref<384x128xbf16, #tpu.memory_space<vmem>>, vector<384x128xbf16>
    %cst = arith.constant dense<0.000000e+00> : vector<16x128xf32>
    %2 = tpu.matmul %0, %1, %cst {dimension_numbers = #tpu.dot_dimension_numbers<[1], [0], [0], [1], [0, 0, 1, 1], [], []>} : vector<16x384xbf16>, vector<384x128xbf16>, vector<16x128xf32> -> vector<16x128xf32>
    %cst_3 = arith.constant 0.000000e+00 : f32
    %3 = vector.broadcast %cst_3 : f32 to vector<16x128xf32>
    %4 = arith.maximumf %2, %3 : vector<16x128xf32>
    %5 = arith.truncf %4 : vector<16x128xf32> to vector<16x128xbf16>
    %c0_4 = arith.constant 0 : index
    %c0_5 = arith.constant 0 : index
    %6 = vector.load %arg3[%c0_4, %c0_5] : memref<16x128xbf16, #tpu.memory_space<vmem>>, vector<16x128xbf16>
    tpu.vector_store %arg3[%c0_4, %c0_5], %5 {strides = array<i32>} : memref<16x128xbf16, #tpu.memory_space<vmem>>, vector<16x128xbf16>,
    return
  }
  func.func @transform_0(%arg0: i32) -> (i32, i32) {
    %c0_i32 = arith.constant 0 : i32
    %c0_i32_0 = arith.constant 0 : i32
    return %arg0, %c0_i32 : i32, i32
  }
  func.func @transform_1(%arg0: i32) -> (i32, i32) {
    %c0_i32 = arith.constant 0 : i32
    %c0_i32_0 = arith.constant 0 : i32
    %c0_i32_1 = arith.constant 0 : i32
    return %c0_i32, %c0_i32_0 : i32, i32
  }
  func.func @transform_2(%arg0: i32) -> (i32, i32) {
    %c0_i32 = arith.constant 0 : i32
    %c0_i32_0 = arith.constant 0 : i32
    return %arg0, %c0_i32 : i32, i32
  }
}

module attributes {stable_mosaic.version = 11 : i64} {
  func.func @_resblock_kernel(%arg0: i32, %arg1: memref<16x1152xbf16, #tpu.memory_space<vmem>>, %arg2: memref<16x128xbf16, #tpu.memory_space<vmem>>, %arg3: memref<1152x128xbf16, #tpu.memory_space<vmem>>, %arg4: memref<128x128xbf16, #tpu.memory_space<vmem>>, %arg5: memref<16x128xbf16, #tpu.memory_space<vmem>>) attributes {dimension_semantics = [#tpu.dimension_semantics<parallel>], iteration_bounds = array<i64: 1>, scalar_prefetch = 0 : i64, scratch_operands = 0 : i64, tpu.core_type = #tpu.core_type<tc>, window_params = [{transform_indices = @transform_0, window_bounds = array<i64: 16, 1152>}, {transform_indices = @transform_1, window_bounds = array<i64: 16, 128>}, {pipeline_mode = #tpu.pipeline_mode<synchronous>, transform_indices = @transform_2, window_bounds = array<i64: 1152, 128>}, {pipeline_mode = #tpu.pipeline_mode<synchronous>, transform_indices = @transform_3, window_bounds = array<i64: 128, 128>}, {transform_indices = @transform_4, window_bounds = array<i64: 16, 128>}]} {
    %c0 = arith.constant 0 : index
    %c0_0 = arith.constant 0 : index
    %0 = vector.load %arg1[%c0, %c0_0] : memref<16x1152xbf16, #tpu.memory_space<vmem>>, vector<16x1152xbf16>
    %c0_1 = arith.constant 0 : index
    %c0_2 = arith.constant 0 : index
    %1 = vector.load %arg3[%c0_1, %c0_2] : memref<1152x128xbf16, #tpu.memory_space<vmem>>, vector<1152x128xbf16>
    %cst = arith.constant dense<0.000000e+00> : vector<16x128xf32>
    %2 = tpu.matmul %0, %1, %cst {dimension_numbers = #tpu.dot_dimension_numbers<[1], [0], [0], [1], [0, 0, 1, 1], [], []>} : vector<16x1152xbf16>, vector<1152x128xbf16>, vector<16x128xf32> -> vector<16x128xf32>
    %cst_3 = arith.constant 0.000000e+00 : f32
    %3 = vector.broadcast %cst_3 : f32 to vector<16x128xf32>
    %4 = arith.maximumf %2, %3 : vector<16x128xf32>
    %5 = arith.truncf %4 : vector<16x128xf32> to vector<16x128xbf16>
    %c0_4 = arith.constant 0 : index
    %c0_5 = arith.constant 0 : index
    %6 = vector.load %arg4[%c0_4, %c0_5] : memref<128x128xbf16, #tpu.memory_space<vmem>>, vector<128x128xbf16>
    %cst_6 = arith.constant dense<0.000000e+00> : vector<16x128xf32>
    %7 = tpu.matmul %5, %6, %cst_6 {dimension_numbers = #tpu.dot_dimension_numbers<[1], [0], [0], [1], [0, 0, 1, 1], [], []>} : vector<16x128xbf16>, vector<128x128xbf16>, vector<16x128xf32> -> vector<16x128xf32>
    %c0_7 = arith.constant 0 : index
    %c0_8 = arith.constant 0 : index
    %8 = vector.load %arg2[%c0_7, %c0_8] : memref<16x128xbf16, #tpu.memory_space<vmem>>, vector<16x128xbf16>
    %9 = arith.extf %8 : vector<16x128xbf16> to vector<16x128xf32>
    %10 = arith.addf %7, %9 : vector<16x128xf32>
    %11 = arith.truncf %10 : vector<16x128xf32> to vector<16x128xbf16>
    %c0_9 = arith.constant 0 : index
    %c0_10 = arith.constant 0 : index
    %12 = vector.load %arg5[%c0_9, %c0_10] : memref<16x128xbf16, #tpu.memory_space<vmem>>, vector<16x128xbf16>
    tpu.vector_store %arg5[%c0_9, %c0_10], %11 {strides = array<i32>} : memref<16x128xbf16, #tpu.memory_space<vmem>>, vector<16x128xbf16>,
    return
  }
  func.func @transform_0(%arg0: i32) -> (i32, i32) {
    %c0_i32 = arith.constant 0 : i32
    %c0_i32_0 = arith.constant 0 : i32
    return %arg0, %c0_i32 : i32, i32
  }
  func.func @transform_1(%arg0: i32) -> (i32, i32) {
    %c0_i32 = arith.constant 0 : i32
    %c0_i32_0 = arith.constant 0 : i32
    return %arg0, %c0_i32 : i32, i32
  }
  func.func @transform_2(%arg0: i32) -> (i32, i32) {
    %c0_i32 = arith.constant 0 : i32
    %c0_i32_0 = arith.constant 0 : i32
    %c0_i32_1 = arith.constant 0 : i32
    return %c0_i32, %c0_i32_0 : i32, i32
  }
  func.func @transform_3(%arg0: i32) -> (i32, i32) {
    %c0_i32 = arith.constant 0 : i32
    %c0_i32_0 = arith.constant 0 : i32
    %c0_i32_1 = arith.constant 0 : i32
    return %c0_i32, %c0_i32_0 : i32, i32
  }
  func.func @transform_4(%arg0: i32) -> (i32, i32) {
    %c0_i32 = arith.constant 0 : i32
    %c0_i32_0 = arith.constant 0 : i32
    return %arg0, %c0_i32 : i32, i32
  }
}

module attributes {stable_mosaic.version = 11 : i64} {
  func.func @_matmul_kernel(%arg0: i32, %arg1: memref<8x1024xbf16, #tpu.memory_space<vmem>>, %arg2: memref<1024x128xbf16, #tpu.memory_space<vmem>>, %arg3: memref<8x128xbf16, #tpu.memory_space<vmem>>) attributes {dimension_semantics = [#tpu.dimension_semantics<parallel>], iteration_bounds = array<i64: 1>, scalar_prefetch = 0 : i64, scratch_operands = 0 : i64, tpu.core_type = #tpu.core_type<tc>, window_params = [{transform_indices = @transform_0, window_bounds = array<i64: 8, 1024>}, {pipeline_mode = #tpu.pipeline_mode<synchronous>, transform_indices = @transform_1, window_bounds = array<i64: 1024, 128>}, {transform_indices = @transform_2, window_bounds = array<i64: 8, 128>}]} {
    %c0 = arith.constant 0 : index
    %c0_0 = arith.constant 0 : index
    %0 = vector.load %arg1[%c0, %c0_0] : memref<8x1024xbf16, #tpu.memory_space<vmem>>, vector<8x1024xbf16>
    %c0_1 = arith.constant 0 : index
    %c0_2 = arith.constant 0 : index
    %1 = vector.load %arg2[%c0_1, %c0_2] : memref<1024x128xbf16, #tpu.memory_space<vmem>>, vector<1024x128xbf16>
    %cst = arith.constant dense<0.000000e+00> : vector<8x128xf32>
    %2 = tpu.matmul %0, %1, %cst {dimension_numbers = #tpu.dot_dimension_numbers<[1], [0], [0], [1], [0, 0, 1, 1], [], []>} : vector<8x1024xbf16>, vector<1024x128xbf16>, vector<8x128xf32> -> vector<8x128xf32>
    %cst_3 = arith.constant 0.000000e+00 : f32
    %3 = vector.broadcast %cst_3 : f32 to vector<8x128xf32>
    %4 = arith.maximumf %2, %3 : vector<8x128xf32>
    %5 = arith.truncf %4 : vector<8x128xf32> to vector<8x128xbf16>
    %c0_4 = arith.constant 0 : index
    %c0_5 = arith.constant 0 : index
    %6 = vector.load %arg3[%c0_4, %c0_5] : memref<8x128xbf16, #tpu.memory_space<vmem>>, vector<8x128xbf16>
    tpu.vector_store %arg3[%c0_4, %c0_5], %5 {strides = array<i32>} : memref<8x128xbf16, #tpu.memory_space<vmem>>, vector<8x128xbf16>,
    return
  }
  func.func @transform_0(%arg0: i32) -> (i32, i32) {
    %c0_i32 = arith.constant 0 : i32
    %c0_i32_0 = arith.constant 0 : i32
    return %arg0, %c0_i32 : i32, i32
  }
  func.func @transform_1(%arg0: i32) -> (i32, i32) {
    %c0_i32 = arith.constant 0 : i32
    %c0_i32_0 = arith.constant 0 : i32
    %c0_i32_1 = arith.constant 0 : i32
    return %c0_i32, %c0_i32_0 : i32, i32
  }
  func.func @transform_2(%arg0: i32) -> (i32, i32) {
    %c0_i32 = arith.constant 0 : i32
    %c0_i32_0 = arith.constant 0 : i32
    return %arg0, %c0_i32 : i32, i32
  }
}

module attributes {stable_mosaic.version = 11 : i64} {
  func.func @_resblock_kernel(%arg0: i32, %arg1: memref<8x1152xbf16, #tpu.memory_space<vmem>>, %arg2: memref<8x128xbf16, #tpu.memory_space<vmem>>, %arg3: memref<1152x128xbf16, #tpu.memory_space<vmem>>, %arg4: memref<128x128xbf16, #tpu.memory_space<vmem>>, %arg5: memref<8x128xbf16, #tpu.memory_space<vmem>>) attributes {dimension_semantics = [#tpu.dimension_semantics<parallel>], iteration_bounds = array<i64: 1>, scalar_prefetch = 0 : i64, scratch_operands = 0 : i64, tpu.core_type = #tpu.core_type<tc>, window_params = [{transform_indices = @transform_0, window_bounds = array<i64: 8, 1152>}, {transform_indices = @transform_1, window_bounds = array<i64: 8, 128>}, {pipeline_mode = #tpu.pipeline_mode<synchronous>, transform_indices = @transform_2, window_bounds = array<i64: 1152, 128>}, {pipeline_mode = #tpu.pipeline_mode<synchronous>, transform_indices = @transform_3, window_bounds = array<i64: 128, 128>}, {transform_indices = @transform_4, window_bounds = array<i64: 8, 128>}]} {
    %c0 = arith.constant 0 : index
    %c0_0 = arith.constant 0 : index
    %0 = vector.load %arg1[%c0, %c0_0] : memref<8x1152xbf16, #tpu.memory_space<vmem>>, vector<8x1152xbf16>
    %c0_1 = arith.constant 0 : index
    %c0_2 = arith.constant 0 : index
    %1 = vector.load %arg3[%c0_1, %c0_2] : memref<1152x128xbf16, #tpu.memory_space<vmem>>, vector<1152x128xbf16>
    %cst = arith.constant dense<0.000000e+00> : vector<8x128xf32>
    %2 = tpu.matmul %0, %1, %cst {dimension_numbers = #tpu.dot_dimension_numbers<[1], [0], [0], [1], [0, 0, 1, 1], [], []>} : vector<8x1152xbf16>, vector<1152x128xbf16>, vector<8x128xf32> -> vector<8x128xf32>
    %cst_3 = arith.constant 0.000000e+00 : f32
    %3 = vector.broadcast %cst_3 : f32 to vector<8x128xf32>
    %4 = arith.maximumf %2, %3 : vector<8x128xf32>
    %5 = arith.truncf %4 : vector<8x128xf32> to vector<8x128xbf16>
    %c0_4 = arith.constant 0 : index
    %c0_5 = arith.constant 0 : index
    %6 = vector.load %arg4[%c0_4, %c0_5] : memref<128x128xbf16, #tpu.memory_space<vmem>>, vector<128x128xbf16>
    %cst_6 = arith.constant dense<0.000000e+00> : vector<8x128xf32>
    %7 = tpu.matmul %5, %6, %cst_6 {dimension_numbers = #tpu.dot_dimension_numbers<[1], [0], [0], [1], [0, 0, 1, 1], [], []>} : vector<8x128xbf16>, vector<128x128xbf16>, vector<8x128xf32> -> vector<8x128xf32>
    %c0_7 = arith.constant 0 : index
    %c0_8 = arith.constant 0 : index
    %8 = vector.load %arg2[%c0_7, %c0_8] : memref<8x128xbf16, #tpu.memory_space<vmem>>, vector<8x128xbf16>
    %9 = arith.extf %8 : vector<8x128xbf16> to vector<8x128xf32>
    %10 = arith.addf %7, %9 : vector<8x128xf32>
    %11 = arith.truncf %10 : vector<8x128xf32> to vector<8x128xbf16>
    %c0_9 = arith.constant 0 : index
    %c0_10 = arith.constant 0 : index
    %12 = vector.load %arg5[%c0_9, %c0_10] : memref<8x128xbf16, #tpu.memory_space<vmem>>, vector<8x128xbf16>
    tpu.vector_store %arg5[%c0_9, %c0_10], %11 {strides = array<i32>} : memref<8x128xbf16, #tpu.memory_space<vmem>>, vector<8x128xbf16>,
    return
  }
  func.func @transform_0(%arg0: i32) -> (i32, i32) {
    %c0_i32 = arith.constant 0 : i32
    %c0_i32_0 = arith.constant 0 : i32
    return %arg0, %c0_i32 : i32, i32
  }
  func.func @transform_1(%arg0: i32) -> (i32, i32) {
    %c0_i32 = arith.constant 0 : i32
    %c0_i32_0 = arith.constant 0 : i32
    return %arg0, %c0_i32 : i32, i32
  }
  func.func @transform_2(%arg0: i32) -> (i32, i32) {
    %c0_i32 = arith.constant 0 : i32
    %c0_i32_0 = arith.constant 0 : i32
    %c0_i32_1 = arith.constant 0 : i32
    return %c0_i32, %c0_i32_0 : i32, i32
  }
  func.func @transform_3(%arg0: i32) -> (i32, i32) {
    %c0_i32 = arith.constant 0 : i32
    %c0_i32_0 = arith.constant 0 : i32
    %c0_i32_1 = arith.constant 0 : i32
    return %c0_i32, %c0_i32_0 : i32, i32
  }
  func.func @transform_4(%arg0: i32) -> (i32, i32) {
    %c0_i32 = arith.constant 0 : i32
    %c0_i32_0 = arith.constant 0 : i32
    return %arg0, %c0_i32 : i32, i32
  }
}

module attributes {stable_mosaic.version = 11 : i64} {
  func.func @_vq_kernel(%arg0: i32, %arg1: memref<32x32xbf16, #tpu.memory_space<vmem>>, %arg2: memref<128x32xf32, #tpu.memory_space<vmem>>, %arg3: memref<1x128xf32, #tpu.memory_space<vmem>>, %arg4: memref<32x32xf32, #tpu.memory_space<vmem>>, %arg5: memref<1x8x128xf32, #tpu.memory_space<vmem>>, %arg6: memref<1x1x1xf32, #tpu.memory_space<vmem>>) attributes {dimension_semantics = [#tpu.dimension_semantics<parallel>], iteration_bounds = array<i64: 1>, scalar_prefetch = 0 : i64, scratch_operands = 0 : i64, tpu.core_type = #tpu.core_type<tc>, window_params = [{transform_indices = @transform_0, window_bounds = array<i64: 32, 32>}, {pipeline_mode = #tpu.pipeline_mode<synchronous>, transform_indices = @transform_1, window_bounds = array<i64: 128, 32>}, {pipeline_mode = #tpu.pipeline_mode<synchronous>, transform_indices = @transform_2, window_bounds = array<i64: 1, 128>}, {transform_indices = @transform_3, window_bounds = array<i64: 32, 32>}, {transform_indices = @transform_4, window_bounds = array<i64: 1, 8, 128>}, {transform_indices = @transform_5, window_bounds = array<i64: 1, 1, 1>}]} {
    %c0 = arith.constant 0 : index
    %c0_0 = arith.constant 0 : index
    %0 = vector.load %arg1[%c0, %c0_0] : memref<32x32xbf16, #tpu.memory_space<vmem>>, vector<32x32xbf16>
    %1 = arith.extf %0 : vector<32x32xbf16> to vector<32x32xf32>
    %c0_1 = arith.constant 0 : index
    %c0_2 = arith.constant 0 : index
    %2 = vector.load %arg2[%c0_1, %c0_2] : memref<128x32xf32, #tpu.memory_space<vmem>>, vector<128x32xf32>
    %c0_3 = arith.constant 0 : index
    %c0_4 = arith.constant 0 : index
    %3 = vector.load %arg3[%c0_3, %c0_4] : memref<1x128xf32, #tpu.memory_space<vmem>>, vector<1x128xf32>
    %4 = arith.truncf %2 : vector<128x32xf32> to vector<128x32xbf16>
    %cst = arith.constant dense<0.000000e+00> : vector<32x128xf32>
    %5 = tpu.matmul %0, %4, %cst {dimension_numbers = #tpu.dot_dimension_numbers<[1], [1], [0], [0], [0, 0, 1, 0], [], []>} : vector<32x32xbf16>, vector<128x32xbf16>, vector<32x128xf32> -> vector<32x128xf32>
    %cst_5 = arith.constant 2.000000e+00 : f32
    %6 = vector.broadcast %cst_5 : f32 to vector<32x128xf32>
    %7 = arith.mulf %6, %5 : vector<32x128xf32>
    %8 = vector.broadcast %3 : vector<1x128xf32> to vector<32x128xf32>
    %9 = arith.subf %8, %7 : vector<32x128xf32>
    %10 = tpu.iota {dimensions = array<i32: 1>} : vector<32x128xi32>
    %cst_6 = arith.constant dense<0x7F800000> : vector<32xf32>
    %11 = vector.multi_reduction <minimumf>, %9, %cst_6 [1] : vector<32x128xf32> to vector<32xf32>
    %12 = vector.shape_cast %11 : vector<32xf32> to vector<32x1xf32>
    %13 = vector.broadcast %12 : vector<32x1xf32> to vector<32x128xf32>
    %14 = arith.cmpf ole, %9, %13 : vector<32x128xf32>
    %c128_i32 = arith.constant 128 : i32
    %15 = vector.broadcast %c128_i32 : i32 to vector<32x128xi32>
    %16 = arith.select %14, %10, %15 : vector<32x128xi1>, vector<32x128xi32>
    %cst_7 = arith.constant dense<2147483647> : vector<32xi32>
    %17 = vector.multi_reduction <minsi>, %16, %cst_7 [1] : vector<32x128xi32> to vector<32xi32>
    %18 = vector.shape_cast %17 : vector<32xi32> to vector<32x1xi32>
    %19 = vector.broadcast %18 : vector<32x1xi32> to vector<32x128xi32>
    %20 = arith.cmpi eq, %10, %19 : vector<32x128xi32>
    %21 = arith.extui %20 : vector<32x128xi1> to vector<32x128xi32>
    %22 = arith.sitofp %21 : vector<32x128xi32> to vector<32x128xf32>
    %cst_8 = arith.constant dense<0.000000e+00> : vector<32x32xf32>
    %23 = tpu.matmul %22, %2, %cst_8 {dimension_numbers = #tpu.dot_dimension_numbers<[1], [0], [0], [1], [0, 0, 1, 1], [], []>} : vector<32x128xf32>, vector<128x32xf32>, vector<32x32xf32> -> vector<32x32xf32>
    %c0_9 = arith.constant 0 : index
    %c0_10 = arith.constant 0 : index
    %24 = vector.load %arg4[%c0_9, %c0_10] : memref<32x32xf32, #tpu.memory_space<vmem>>, vector<32x32xf32>
    tpu.vector_store %arg4[%c0_9, %c0_10], %23 {strides = array<i32>} : memref<32x32xf32, #tpu.memory_space<vmem>>, vector<32x32xf32>,
    %c32_i32 = arith.constant 32 : i32
    %25 = arith.muli %arg0, %c32_i32 : i32
    %26 = tpu.iota {dimensions = array<i32: 0>} : vector<32x1xi32>
    %27 = vector.broadcast %25 : i32 to vector<32x1xi32>
    %28 = arith.addi %27, %26 : vector<32x1xi32>
    %c32_i32_11 = arith.constant 32 : i32
    %29 = vector.broadcast %c32_i32_11 : i32 to vector<32x1xi32>
    %30 = arith.cmpi slt, %28, %29 : vector<32x1xi32>
    %cst_12 = arith.constant 0.000000e+00 : f32
    %31 = vector.shape_cast %30 : vector<32x1xi1> to vector<32x1xi1>
    %32 = vector.broadcast %31 : vector<32x1xi1> to vector<32x128xi1>
    %33 = vector.broadcast %cst_12 : f32 to vector<32x128xf32>
    %34 = arith.select %32, %22, %33 : vector<32x128xi1>, vector<32x128xf32>
    %cst_13 = arith.constant dense<0.000000e+00> : vector<128xf32>
    %35 = vector.multi_reduction <add>, %34, %cst_13 [0] : vector<32x128xf32> to vector<128xf32>
    %36 = vector.shape_cast %35 : vector<128xf32> to vector<1x128xf32>
    %cst_14 = arith.constant 1.000000e+00 : f32
    %37 = vector.broadcast %cst_14 : f32 to vector<8x1xf32>
    %38 = vector.broadcast %36 : vector<1x128xf32> to vector<8x128xf32>
    %39 = vector.broadcast %37 : vector<8x1xf32> to vector<8x128xf32>
    %40 = arith.mulf %38, %39 : vector<8x128xf32>
    %41 = vector.shape_cast %40 : vector<8x128xf32> to vector<1x8x128xf32>
    %c0_15 = arith.constant 0 : index
    %c0_16 = arith.constant 0 : index
    %c0_17 = arith.constant 0 : index
    %42 = vector.load %arg5[%c0_15, %c0_16, %c0_17] : memref<1x8x128xf32, #tpu.memory_space<vmem>>, vector<1x8x128xf32>
    tpu.vector_store %arg5[%c0_15, %c0_16, %c0_17], %41 {strides = array<i32>} : memref<1x8x128xf32, #tpu.memory_space<vmem>>, vector<1x8x128xf32>,
    %43 = arith.subf %23, %1 : vector<32x32xf32>
    %cst_18 = arith.constant 0.000000e+00 : f32
    %44 = vector.shape_cast %30 : vector<32x1xi1> to vector<32x1xi1>
    %45 = vector.broadcast %44 : vector<32x1xi1> to vector<32x32xi1>
    %46 = vector.broadcast %cst_18 : f32 to vector<32x32xf32>
    %47 = arith.select %45, %43, %46 : vector<32x32xi1>, vector<32x32xf32>
    %48 = arith.mulf %47, %47 : vector<32x32xf32>
    %cst_19 = arith.constant dense<0.000000e+00> : vector<32xf32>
    %49 = vector.multi_reduction <add>, %48, %cst_19 [1] : vector<32x32xf32> to vector<32xf32>
    %50 = vector.shape_cast %49 : vector<32xf32> to vector<32x1xf32>
    %cst_20 = arith.constant dense<0.000000e+00> : vector<1xf32>
    %51 = vector.multi_reduction <add>, %50, %cst_20 [0] : vector<32x1xf32> to vector<1xf32>
    %52 = vector.shape_cast %51 : vector<1xf32> to vector<1x1xf32>
    %53 = vector.shape_cast %52 : vector<1x1xf32> to vector<1x1x1xf32>
    %c0_21 = arith.constant 0 : index
    %c0_22 = arith.constant 0 : index
    %c0_23 = arith.constant 0 : index
    %54 = vector.load %arg6[%c0_21, %c0_22, %c0_23] : memref<1x1x1xf32, #tpu.memory_space<vmem>>, vector<1x1x1xf32>
    tpu.vector_store %arg6[%c0_21, %c0_22, %c0_23], %53 {strides = array<i32>} : memref<1x1x1xf32, #tpu.memory_space<vmem>>, vector<1x1x1xf32>,
    return
  }
  func.func @transform_0(%arg0: i32) -> (i32, i32) {
    %c0_i32 = arith.constant 0 : i32
    %c0_i32_0 = arith.constant 0 : i32
    return %arg0, %c0_i32 : i32, i32
  }
  func.func @transform_1(%arg0: i32) -> (i32, i32) {
    %c0_i32 = arith.constant 0 : i32
    %c0_i32_0 = arith.constant 0 : i32
    %c0_i32_1 = arith.constant 0 : i32
    return %c0_i32, %c0_i32_0 : i32, i32
  }
  func.func @transform_2(%arg0: i32) -> (i32, i32) {
    %c0_i32 = arith.constant 0 : i32
    %c0_i32_0 = arith.constant 0 : i32
    %c0_i32_1 = arith.constant 0 : i32
    return %c0_i32, %c0_i32_0 : i32, i32
  }
  func.func @transform_3(%arg0: i32) -> (i32, i32) {
    %c0_i32 = arith.constant 0 : i32
    %c0_i32_0 = arith.constant 0 : i32
    return %arg0, %c0_i32 : i32, i32
  }
  func.func @transform_4(%arg0: i32) -> (i32, i32, i32) {
    %c0_i32 = arith.constant 0 : i32
    %c0_i32_0 = arith.constant 0 : i32
    %c0_i32_1 = arith.constant 0 : i32
    return %arg0, %c0_i32, %c0_i32_0 : i32, i32, i32
  }
  func.func @transform_5(%arg0: i32) -> (i32, i32, i32) {
    %c0_i32 = arith.constant 0 : i32
    %c0_i32_0 = arith.constant 0 : i32
    %c0_i32_1 = arith.constant 0 : i32
    return %arg0, %c0_i32, %c0_i32_0 : i32, i32, i32
  }
}

module attributes {stable_mosaic.version = 11 : i64} {
  func.func @_matmul_kernel(%arg0: i32, %arg1: memref<16x576xbf16, #tpu.memory_space<vmem>>, %arg2: memref<576x128xbf16, #tpu.memory_space<vmem>>, %arg3: memref<16x128xbf16, #tpu.memory_space<vmem>>) attributes {dimension_semantics = [#tpu.dimension_semantics<parallel>], iteration_bounds = array<i64: 1>, scalar_prefetch = 0 : i64, scratch_operands = 0 : i64, tpu.core_type = #tpu.core_type<tc>, window_params = [{transform_indices = @transform_0, window_bounds = array<i64: 16, 576>}, {pipeline_mode = #tpu.pipeline_mode<synchronous>, transform_indices = @transform_1, window_bounds = array<i64: 576, 128>}, {transform_indices = @transform_2, window_bounds = array<i64: 16, 128>}]} {
    %c0 = arith.constant 0 : index
    %c0_0 = arith.constant 0 : index
    %0 = vector.load %arg1[%c0, %c0_0] : memref<16x576xbf16, #tpu.memory_space<vmem>>, vector<16x576xbf16>
    %c0_1 = arith.constant 0 : index
    %c0_2 = arith.constant 0 : index
    %1 = vector.load %arg2[%c0_1, %c0_2] : memref<576x128xbf16, #tpu.memory_space<vmem>>, vector<576x128xbf16>
    %cst = arith.constant dense<0.000000e+00> : vector<16x128xf32>
    %2 = tpu.matmul %0, %1, %cst {dimension_numbers = #tpu.dot_dimension_numbers<[1], [0], [0], [1], [0, 0, 1, 1], [], []>} : vector<16x576xbf16>, vector<576x128xbf16>, vector<16x128xf32> -> vector<16x128xf32>
    %cst_3 = arith.constant 0.000000e+00 : f32
    %3 = vector.broadcast %cst_3 : f32 to vector<16x128xf32>
    %4 = arith.maximumf %2, %3 : vector<16x128xf32>
    %5 = arith.truncf %4 : vector<16x128xf32> to vector<16x128xbf16>
    %c0_4 = arith.constant 0 : index
    %c0_5 = arith.constant 0 : index
    %6 = vector.load %arg3[%c0_4, %c0_5] : memref<16x128xbf16, #tpu.memory_space<vmem>>, vector<16x128xbf16>
    tpu.vector_store %arg3[%c0_4, %c0_5], %5 {strides = array<i32>} : memref<16x128xbf16, #tpu.memory_space<vmem>>, vector<16x128xbf16>,
    return
  }
  func.func @transform_0(%arg0: i32) -> (i32, i32) {
    %c0_i32 = arith.constant 0 : i32
    %c0_i32_0 = arith.constant 0 : i32
    return %arg0, %c0_i32 : i32, i32
  }
  func.func @transform_1(%arg0: i32) -> (i32, i32) {
    %c0_i32 = arith.constant 0 : i32
    %c0_i32_0 = arith.constant 0 : i32
    %c0_i32_1 = arith.constant 0 : i32
    return %c0_i32, %c0_i32_0 : i32, i32
  }
  func.func @transform_2(%arg0: i32) -> (i32, i32) {
    %c0_i32 = arith.constant 0 : i32
    %c0_i32_0 = arith.constant 0 : i32
    return %arg0, %c0_i32 : i32, i32
  }
}

module attributes {stable_mosaic.version = 11 : i64} {
  func.func @_matmul_kernel(%arg0: i32, %arg1: memref<128x144xbf16, #tpu.memory_space<vmem>>, %arg2: memref<144x12xbf16, #tpu.memory_space<vmem>>, %arg3: memref<128x12xf32, #tpu.memory_space<vmem>>) attributes {dimension_semantics = [#tpu.dimension_semantics<parallel>], iteration_bounds = array<i64: 1>, scalar_prefetch = 0 : i64, scratch_operands = 0 : i64, tpu.core_type = #tpu.core_type<tc>, window_params = [{transform_indices = @transform_0, window_bounds = array<i64: 128, 144>}, {pipeline_mode = #tpu.pipeline_mode<synchronous>, transform_indices = @transform_1, window_bounds = array<i64: 144, 12>}, {transform_indices = @transform_2, window_bounds = array<i64: 128, 12>}]} {
    %c0 = arith.constant 0 : index
    %c0_0 = arith.constant 0 : index
    %0 = vector.load %arg1[%c0, %c0_0] : memref<128x144xbf16, #tpu.memory_space<vmem>>, vector<128x144xbf16>
    %c0_1 = arith.constant 0 : index
    %c0_2 = arith.constant 0 : index
    %1 = vector.load %arg2[%c0_1, %c0_2] : memref<144x12xbf16, #tpu.memory_space<vmem>>, vector<144x12xbf16>
    %cst = arith.constant dense<0.000000e+00> : vector<128x12xf32>
    %2 = tpu.matmul %0, %1, %cst {dimension_numbers = #tpu.dot_dimension_numbers<[1], [0], [0], [1], [0, 0, 1, 1], [], []>} : vector<128x144xbf16>, vector<144x12xbf16>, vector<128x12xf32> -> vector<128x12xf32>
    %3 = math.absf %2 : vector<128x12xf32>
    %cst_3 = arith.constant 0.000000e+00 : f32
    %4 = vector.broadcast %cst_3 : f32 to vector<128x12xf32>
    %5 = arith.subf %4, %3 : vector<128x12xf32>
    %6 = math.exp %5 : vector<128x12xf32>
    %cst_4 = arith.constant 1.000000e+00 : f32
    %7 = vector.broadcast %cst_4 : f32 to vector<128x12xf32>
    %8 = arith.addf %7, %6 : vector<128x12xf32>
    %9 = tpu.reciprocal %8 {approx = true} : vector<128x12xf32> -> vector<128x12xf32>
    %cst_5 = arith.constant 0.000000e+00 : f32
    %10 = vector.broadcast %cst_5 : f32 to vector<128x12xf32>
    %11 = arith.cmpf oge, %2, %10 : vector<128x12xf32>
    %12 = arith.mulf %6, %9 : vector<128x12xf32>
    %13 = arith.select %11, %9, %12 : vector<128x12xi1>, vector<128x12xf32>
    %c0_6 = arith.constant 0 : index
    %c0_7 = arith.constant 0 : index
    %14 = vector.load %arg3[%c0_6, %c0_7] : memref<128x12xf32, #tpu.memory_space<vmem>>, vector<128x12xf32>
    tpu.vector_store %arg3[%c0_6, %c0_7], %13 {strides = array<i32>} : memref<128x12xf32, #tpu.memory_space<vmem>>, vector<128x12xf32>,
    return
  }
  func.func @transform_0(%arg0: i32) -> (i32, i32) {
    %c0_i32 = arith.constant 0 : i32
    %c0_i32_0 = arith.constant 0 : i32
    return %arg0, %c0_i32 : i32, i32
  }
  func.func @transform_1(%arg0: i32) -> (i32, i32) {
    %c0_i32 = arith.constant 0 : i32
    %c0_i32_0 = arith.constant 0 : i32
    %c0_i32_1 = arith.constant 0 : i32
    return %c0_i32, %c0_i32_0 : i32, i32
  }
  func.func @transform_2(%arg0: i32) -> (i32, i32) {
    %c0_i32 = arith.constant 0 : i32
    %c0_i32_0 = arith.constant 0 : i32
    return %arg0, %c0_i32 : i32, i32
  }
}

</mosaic_0001>

<bundles_post_ra>
// kernel: vqvae_forward.13
= control target key start
LH: loop header
LB: loop body
LE: loop exit
PB: predicated region body
PF: predicated region fallthrough
CT: control target
= control target key end

     0   :  { %v439_v1 = vmov 0.0   ;;  %vm440_vm0 = vmmov 0   ;;  %s540_s1 = inlined_call_operand.vmem [shape: bf16[384,128], index: 1, kind: input, shape index: {}]   ;;  %s541_s0 = inlined_call_operand.vmem [shape: bf16[16,384], index: 0, kind: input, shape index: {}]   ;;  %s542_s2 = inlined_call_operand.vmem [shape: bf16[16,128], index: 2, kind: output, shape index: {}]  }
   0x1   :  { %v411_v0 = vld [vmem:[%s540_s1 + $0x40] sm:$0xff]   ;;  %389 = vmatprep.subr.bf16.mxu1 %v439_v1  ;;  %405 = vmatprep.mubr.msk.bf16.mxu1 %vm440_vm0, %v439_v1  ;;  %v414_v4 = vld [vmem:[%s540_s1 + $0x48] sm:$0xff]   ;;  %v417_v7 = vld [vmem:[%s540_s1 + $0x50] sm:$0xff]  }
   0x2   :  { %v412_v2 = vld [vmem:[%s540_s1] sm:$0xff]   ;;  %358 = vmatprep.subr.bf16.mxu0 %v411_v0  ;;  %v415_v5 = vld [vmem:[%s540_s1 + $0x8] sm:$0xff]   ;;  %v418_v8 = vld [vmem:[%s540_s1 + $0x10] sm:$0xff]  }
   0x3   :  { %v413_v3 = vld [vmem:[%s540_s1 + $0x80] sm:$0xff]   ;;  %359 = vmatpush3.bf16.msra.mxu0 %v412_v2  ;;  %v416_v6 = vld [vmem:[%s540_s1 + $0x88] sm:$0xff]   ;;  %v419_v9 = vld [vmem:[%s540_s1 + $0x90] sm:$0xff]  }
   0x4   :  { %390 = vmatpush3.bf16.msra.mxu1 %v413_v3  ;;  %360 = vmatprep.subr.bf16.mxu0 %v414_v4  ;;  %v420_v10 = vld [vmem:[%s540_s1 + $0x58] sm:$0xff]   ;;  %v423_v13 = vld [vmem:[%s540_s1 + $0x60] sm:$0xff]   ;;  %v426_v16 = vld [vmem:[%s540_s1 + $0x68] sm:$0xff]  }
   0x5   :  { %391 = vmatprep.subr.bf16.mxu1 %v439_v1  ;;  %v421_v11 = vld [vmem:[%s540_s1 + $0x18] sm:$0xff]   ;;  %v424_v14 = vld [vmem:[%s540_s1 + $0x20] sm:$0xff]   ;;  %v427_v17 = vld [vmem:[%s540_s1 + $0x28] sm:$0xff]  }
   0x6   :  { %v422_v12 = vld [vmem:[%s540_s1 + $0x98] sm:$0xff]   ;;  %v425_v15 = vld [vmem:[%s540_s1 + $0xa0] sm:$0xff]   ;;  %v428_v18 = vld [vmem:[%s540_s1 + $0xa8] sm:$0xff]  }
   0x7   :  { %361 = vmatpush3.bf16.msra.mxu0 %v415_v5  ;;  %v429_v19 = vld [vmem:[%s540_s1 + $0x70] sm:$0xff]   ;;  %v432_v22 = vld [vmem:[%s540_s1 + $0x78] sm:$0xff]   ;;  %v435_v26 = vld [vmem:[%s541_s0] ss:$12 sps:$4 sm:$0xff]  }
   0x8   :  { %392 = vmatpush3.bf16.msra.mxu1 %v416_v6  ;;  %362 = vmatprep.subr.bf16.mxu0 %v417_v7  ;;  %v430_v20 = vld [vmem:[%s540_s1 + $0x30] sm:$0xff]   ;;  %v433_v24 = vld [vmem:[%s540_s1 + $0x38] sm:$0xff]  }
   0x9   :  { %393 = vmatprep.subr.bf16.mxu1 %v439_v1  ;;  %v431_v21 = vld [vmem:[%s540_s1 + $0xb0] sm:$0xff]   ;;  %v434_v25 = vld [vmem:[%s540_s1 + $0xb8] sm:$0xff]  }
   0xa   :  { %v437_v23 = vld [vmem:[%s541_s0 + $0x4] ss:$12 sps:$4 sm:$0xff]   ;;  %v438_v27 = vld [vmem:[%s541_s0 + $0x8] ss:$12 sps:$4 sm:$0xff]  }
   0xb   :  { %363 = vmatpush3.bf16.msra.mxu0 %v418_v8  ;;  %256 = vmatprep.mubr.bf16.mxu0 %v437_v23 }
   0xc   :  { %394 = vmatpush3.bf16.msra.mxu1 %v419_v9  ;;  %364 = vmatprep.subr.bf16.mxu0 %v420_v10 }
   0xd   :  { %395 = vmatprep.subr.bf16.mxu1 %v439_v1 }
   0xf   :  { %365 = vmatpush3.bf16.msra.mxu0 %v421_v11 }
  0x10   :  { %396 = vmatpush3.bf16.msra.mxu1 %v422_v12  ;;  %366 = vmatprep.subr.bf16.mxu0 %v423_v13 }
  0x11   :  { %397 = vmatprep.subr.bf16.mxu1 %v439_v1 }
  0x13   :  { %367 = vmatpush3.bf16.msra.mxu0 %v424_v14 }
  0x14   :  { %398 = vmatpush3.bf16.msra.mxu1 %v425_v15  ;;  %368 = vmatprep.subr.bf16.mxu0 %v426_v16 }
  0x15   :  { %399 = vmatprep.subr.bf16.mxu1 %v439_v1 }
  0x17   :  { %369 = vmatpush3.bf16.msra.mxu0 %v427_v17 }
  0x18   :  { %400 = vmatpush3.bf16.msra.mxu1 %v428_v18  ;;  %370 = vmatprep.subr.bf16.mxu0 %v429_v19 }
  0x19   :  { %401 = vmatprep.subr.bf16.mxu1 %v439_v1 }
  0x1b   :  { %371 = vmatpush3.bf16.msra.mxu0 %v430_v20 }
  0x1c   :  { %402 = vmatpush3.bf16.msra.mxu1 %v431_v21  ;;  %372 = vmatprep.subr.bf16.mxu0 %v432_v22 }
  0x1d   :  { %403 = vmatprep.subr.bf16.mxu1 %v439_v1 }
  0x1f   :  { %373 = vmatpush3.bf16.msra.mxu0 %v433_v24 }
  0x20   :  { %404 = vmatpush3.bf16.msra.mxu1 %v434_v25 }
  0x22   :  { %257 = vmatmul.mubr.bf16.vlgmr.msra.gmra.mrb[0].mxu0 %v435_v26 }
  0x23   :  { %406 = vmatmul.mubr.bf16.vlgmr.msra.gmra.mrb[0].mxu1 %v438_v27 }
  0xf5   :  { %v374_v28 = vpop.f32.mrb[0].mxu0 }
  0xf6   :  { %v299_v29 = vpop.f32.mrb[0].mxu1  ;;  %v375_v30 = vpop.f32.mrb[1].mxu0 }
  0xf7   :  { %v376_v31 = vadd.f32 %v375_v30, %v374_v28  ;;  %v407_v32 = vpop.f32.mrb[1].mxu1  ;;  %v377_v33 = vpop.f32.mrb[2].mxu0 }
  0xf8   :  { %v302_v34 = vpop.f32.mrb[2].mxu1  ;;  %v378_v35 = vpop.f32.mrb[3].mxu0 }
  0xf9   :  { %v300_v36 = vadd.f32 %v376_v31, %v299_v29  ;;  %v379_v37 = vadd.f32 %v378_v35, %v377_v33  ;;  %v408_v38 = vpop.f32.mrb[3].mxu1 }
  0xfb   :  { %v303_v39 = vadd.f32 %v379_v37, %v302_v34  ;;  %v306_v40 = vmax.f32 %v300_v36, 0.0 }
  0xfd   :  { %v307_v41 = vmax.f32 %v303_v39, 0.0 }
  0xff   :  { %v356_v42 = vpack.c.bf16 %v307_v41, %v306_v40 }
 0x101   :  { %357 = vst [vmem:[%s542_s2] sm:$0xff] %v356_v42  }

// kernel: vqvae_forward.14
= control target key start
LH: loop header
LB: loop body
LE: loop exit
PB: predicated region body
PF: predicated region fallthrough
CT: control target
= control target key end

     0   :  { %vm1325_vm0 = vmmov 0   ;;  %s1624_s2 = inlined_call_operand.vmem [shape: bf16[1152,128], index: 2, kind: input, shape index: {}]   ;;  %s1625_s0 = inlined_call_operand.vmem [shape: bf16[16,1152], index: 0, kind: input, shape index: {}]   ;;  %s1626_s3 = inlined_call_operand.vmem [shape: bf16[128,128], index: 3, kind: input, shape index: {}]   ;;  %s1627_s1 = inlined_call_operand.vmem [shape: bf16[16,128], index: 1, kind: input, shape index: {}]   ;;  %s1628_s4 = inlined_call_operand.vmem [shape: bf16[16,128], index: 4, kind: output, shape index: {}]  }
   0x1   :  { %v1231_v0 = vld [vmem:[%s1624_s2 + $0x40] sm:$0xff]   ;;  %v1235_v4 = vld [vmem:[%s1624_s2 + $0x48] sm:$0xff]   ;;  %v1239_v8 = vld [vmem:[%s1624_s2 + $0x50] sm:$0xff]  }
   0x2   :  { %v1232_v1 = vld [vmem:[%s1624_s2 + $0xc0] sm:$0xff]   ;;  %1083 = vmatprep.subr.bf16.mxu0 %v1231_v0  ;;  %v1236_v5 = vld [vmem:[%s1624_s2 + $0xc8] sm:$0xff]   ;;  %v1240_v9 = vld [vmem:[%s1624_s2 + $0xd0] sm:$0xff]  }
   0x3   :  { %v1233_v2 = vld [vmem:[%s1624_s2] sm:$0xff]   ;;  %1105 = vmatprep.subr.bf16.mxu1 %v1232_v1  ;;  %v1237_v6 = vld [vmem:[%s1624_s2 + $0x8] sm:$0xff]   ;;  %v1241_v10 = vld [vmem:[%s1624_s2 + $0x10] sm:$0xff]  }
   0x4   :  { %v1234_v3 = vld [vmem:[%s1624_s2 + $0x80] sm:$0xff]   ;;  %1084 = vmatpush3.bf16.msra.mxu0 %v1233_v2  ;;  %v1238_v7 = vld [vmem:[%s1624_s2 + $0x88] sm:$0xff]   ;;  %v1242_v11 = vld [vmem:[%s1624_s2 + $0x90] sm:$0xff]  }
   0x5   :  { %1106 = vmatpush3.bf16.msra.mxu1 %v1234_v3  ;;  %1085 = vmatprep.subr.bf16.mxu0 %v1235_v4  ;;  %v1243_v12 = vld [vmem:[%s1624_s2 + $0x58] sm:$0xff]   ;;  %v1247_v16 = vld [vmem:[%s1624_s2 + $0x60] sm:$0xff]   ;;  %v1251_v20 = vld [vmem:[%s1624_s2 + $0x68] sm:$0xff]  }
   0x6   :  { %1107 = vmatprep.subr.bf16.mxu1 %v1236_v5  ;;  %v1244_v13 = vld [vmem:[%s1624_s2 + $0xd8] sm:$0xff]   ;;  %v1248_v17 = vld [vmem:[%s1624_s2 + $0xe0] sm:$0xff]   ;;  %v1252_v21 = vld [vmem:[%s1624_s2 + $0xe8] sm:$0xff]  }
   0x7   :  { %v1245_v14 = vld [vmem:[%s1624_s2 + $0x18] sm:$0xff]   ;;  %v1249_v18 = vld [vmem:[%s1624_s2 + $0x20] sm:$0xff]   ;;  %v1253_v22 = vld [vmem:[%s1624_s2 + $0x28] sm:$0xff]  }
   0x8   :  { %1086 = vmatpush3.bf16.msra.mxu0 %v1237_v6  ;;  %v1246_v15 = vld [vmem:[%s1624_s2 + $0x98] sm:$0xff]   ;;  %v1250_v19 = vld [vmem:[%s1624_s2 + $0xa0] sm:$0xff]   ;;  %v1254_v23 = vld [vmem:[%s1624_s2 + $0xa8] sm:$0xff]   ;;  %v1324_v6 = vmov 0.0  }
   0x9   :  { %1108 = vmatpush3.bf16.msra.mxu1 %v1238_v7  ;;  %1087 = vmatprep.subr.bf16.mxu0 %v1239_v8  ;;  %v1255_v24 = vld [vmem:[%s1624_s2 + $0x70] sm:$0xff]   ;;  %v1259_v28 = vld [vmem:[%s1624_s2 + $0x78] sm:$0xff]   ;;  %v1263_v32 = vld [vmem:[%s1625_s0] ss:$36 sps:$4 sm:$0xff]  }
   0xa   :  { %1109 = vmatprep.subr.bf16.mxu1 %v1240_v9  ;;  %v1256_v25 = vld [vmem:[%s1624_s2 + $0xf0] sm:$0xff]   ;;  %v1260_v29 = vld [vmem:[%s1624_s2 + $0xf8] sm:$0xff]   ;;  %v1265_v33 = vld [vmem:[%s1625_s0 + $0x4] ss:$36 sps:$4 sm:$0xff]  }
   0xb   :  { %v1257_v26 = vld [vmem:[%s1624_s2 + $0x30] sm:$0xff]   ;;  %v1261_v30 = vld [vmem:[%s1624_s2 + $0x38] sm:$0xff]   ;;  %v1266_v34 = vld [vmem:[%s1625_s0 + $0x8] ss:$36 sps:$4 sm:$0xff]   ;;  %682 = vmatprep.mubr.bf16.mxu0 %v1265_v33 }
   0xc   :  { %1088 = vmatpush3.bf16.msra.mxu0 %v1241_v10  ;;  %v1258_v27 = vld [vmem:[%s1624_s2 + $0xb0] sm:$0xff]   ;;  %v1262_v31 = vld [vmem:[%s1624_s2 + $0xb8] sm:$0xff]   ;;  %v1269_v36 = vld [vmem:[%s1624_s2 + $0x140] sm:$0xff]  }
   0xd   :  { %1110 = vmatpush3.bf16.msra.mxu1 %v1242_v11  ;;  %1089 = vmatprep.subr.bf16.mxu0 %v1243_v12  ;;  %v1268_v35 = vld [vmem:[%s1625_s0 + $0xc] ss:$36 sps:$4 sm:$0xff]   ;;  %v1270_v37 = vld [vmem:[%s1624_s2 + $0x100] sm:$0xff]   ;;  %v1281_v48 = vld [vmem:[%s1624_s2 + $0x158] sm:$0xff]  }
   0xe   :  { %1111 = vmatprep.subr.bf16.mxu1 %v1244_v13  ;;  %723 = vmatprep.mubr.bf16.mxu1 %v1268_v35  ;;  %v1271_v38 = vld [vmem:[%s1624_s2 + $0x1c0] sm:$0xff]   ;;  %v1273_v40 = vld [vmem:[%s1624_s2 + $0x148] sm:$0xff]   ;;  %v1277_v44 = vld [vmem:[%s1624_s2 + $0x150] sm:$0xff]  }
   0xf   :  { %v1272_v39 = vld [vmem:[%s1624_s2 + $0x180] sm:$0xff]   ;;  %v1274_v41 = vld [vmem:[%s1624_s2 + $0x108] sm:$0xff]   ;;  %v1278_v45 = vld [vmem:[%s1624_s2 + $0x110] sm:$0xff]  }
  0x10   :  { %1090 = vmatpush3.bf16.msra.mxu0 %v1245_v14  ;;  %v1275_v42 = vld [vmem:[%s1624_s2 + $0x1c8] sm:$0xff]   ;;  %v1279_v46 = vld [vmem:[%s1624_s2 + $0x1d0] sm:$0xff]   ;;  %v1282_v49 = vld [vmem:[%s1624_s2 + $0x118] sm:$0xff]  }
  0x11   :  { %1112 = vmatpush3.bf16.msra.mxu1 %v1246_v15  ;;  %1091 = vmatprep.subr.bf16.mxu0 %v1247_v16  ;;  %v1276_v43 = vld [vmem:[%s1624_s2 + $0x188] sm:$0xff]   ;;  %v1280_v47 = vld [vmem:[%s1624_s2 + $0x190] sm:$0xff]   ;;  %v1283_v50 = vld [vmem:[%s1624_s2 + $0x1d8] sm:$0xff]  }
  0x12   :  { %1113 = vmatprep.subr.bf16.mxu1 %v1248_v17  ;;  %v1284_v51 = vld [vmem:[%s1624_s2 + $0x198] sm:$0xff]   ;;  %v1285_v52 = vld [vmem:[%s1624_s2 + $0x160] sm:$0xff]   ;;  %v1289_v56 = vld [vmem:[%s1624_s2 + $0x168] sm:$0xff]  }
  0x13   :  { %v1286_v53 = vld [vmem:[%s1624_s2 + $0x120] sm:$0xff]   ;;  %v1290_v57 = vld [vmem:[%s1624_s2 + $0x128] sm:$0xff]   ;;  %v1293_v60 = vld [vmem:[%s1624_s2 + $0x170] sm:$0xff]  }
  0x14   :  { %1092 = vmatpush3.bf16.msra.mxu0 %v1249_v18  ;;  %v1287_v54 = vld [vmem:[%s1624_s2 + $0x1e0] sm:$0xff]   ;;  %v1291_v58 = vld [vmem:[%s1624_s2 + $0x1e8] sm:$0xff]   ;;  %v1294_v61 = vld [vmem:[%s1624_s2 + $0x130] sm:$0xff]  }
  0x15   :  { %1114 = vmatpush3.bf16.msra.mxu1 %v1250_v19  ;;  %1093 = vmatprep.subr.bf16.mxu0 %v1251_v20  ;;  %v1288_v55 = vld [vmem:[%s1624_s2 + $0x1a0] sm:$0xff]   ;;  %v1292_v59 = vld [vmem:[%s1624_s2 + $0x1a8] sm:$0xff]   ;;  %v1295_v62 = vld [vmem:[%s1624_s2 + $0x1f0] sm:$0xff]  }
  0x16   :  { %1115 = vmatprep.subr.bf16.mxu1 %v1252_v21  ;;  %v1296_v63 = vld [vmem:[%s1624_s2 + $0x1b0] sm:$0xff]   ;;  %v1297_v0 = vld [vmem:[%s1624_s2 + $0x178] sm:$0xff]   ;;  %v1307_v9 = vld [vmem:[%s1624_s2 + $0x200] sm:$0xff]  }
  0x17   :  { %v1298_v1 = vld [vmem:[%s1624_s2 + $0x138] sm:$0xff]   ;;  %v1300_v3 = vld [vmem:[%s1625_s0 + $0x10] ss:$36 sps:$4 sm:$0xff]   ;;  %v1308_v10 = vld [vmem:[%s1624_s2 + $0x208] sm:$0xff]  }
  0x18   :  { %1094 = vmatpush3.bf16.msra.mxu0 %v1253_v22  ;;  %v1299_v2 = vld [vmem:[%s1624_s2 + $0x1f8] sm:$0xff]   ;;  %v1309_v11 = vld [vmem:[%s1624_s2 + $0x210] sm:$0xff]   ;;  %v1311_v13 = vld [vmem:[%s1624_s2 + $0x220] sm:$0xff]  }
  0x19   :  { %1116 = vmatpush3.bf16.msra.mxu1 %v1254_v23  ;;  %1095 = vmatprep.subr.bf16.mxu0 %v1255_v24  ;;  %v1302_v4 = vld [vmem:[%s1625_s0 + $0x14] ss:$36 sps:$4 sm:$0xff]   ;;  %v1306_v8 = vld [vmem:[%s1625_s0 + $0x1c] ss:$36 sps:$4 sm:$0xff]   ;;  %v1312_v14 = vld [vmem:[%s1624_s2 + $0x228] sm:$0xff]  }
  0x1a   :  { %1117 = vmatprep.subr.bf16.mxu1 %v1256_v25  ;;  %v1303_v5 = vld [vmem:[%s1624_s2 + $0x1b8] sm:$0xff]   ;;  %v1313_v15 = vld [vmem:[%s1624_s2 + $0x230] sm:$0xff]   ;;  %v1315_v17 = vld [vmem:[%s1625_s0 + $0x20] ss:$36 sps:$4 sm:$0xff]  }
  0x1b   :  { %v1304_v7 = vld [vmem:[%s1625_s0 + $0x18] ss:$36 sps:$4 sm:$0xff]   ;;  %v1316_v18 = vld [vmem:[%s1626_s3] sm:$0xff]   ;;  %v1317_v19 = vld [vmem:[%s1626_s3 + $0x8] sm:$0xff]  }
  0x1c   :  { %1096 = vmatpush3.bf16.msra.mxu0 %v1257_v26  ;;  %v1310_v12 = vld [vmem:[%s1624_s2 + $0x218] sm:$0xff]   ;;  %v1318_v20 = vld [vmem:[%s1626_s3 + $0x10] sm:$0xff]   ;;  %v1320_v22 = vld [vmem:[%s1626_s3 + $0x20] sm:$0xff]  }
  0x1d   :  { %1118 = vmatpush3.bf16.msra.mxu1 %v1258_v27  ;;  %1097 = vmatprep.subr.bf16.mxu0 %v1259_v28  ;;  %v1314_v16 = vld [vmem:[%s1624_s2 + $0x238] sm:$0xff]   ;;  %v1321_v23 = vld [vmem:[%s1626_s3 + $0x28] sm:$0xff]   ;;  %v1322_v24 = vld [vmem:[%s1626_s3 + $0x30] sm:$0xff]  }
  0x1e   :  { %1119 = vmatprep.subr.bf16.mxu1 %v1260_v29  ;;  %v1319_v21 = vld [vmem:[%s1626_s3 + $0x18] sm:$0xff]  }
  0x1f   :  { %v1323_v25 = vld [vmem:[%s1626_s3 + $0x38] sm:$0xff]  }
  0x20   :  { %1098 = vmatpush3.bf16.msra.mxu0 %v1261_v30 }
  0x21   :  { %1120 = vmatpush3.bf16.msra.mxu1 %v1262_v31  ;;  %1127 = vmatprep.subr.bf16.mxu0 %v1269_v36 }
  0x22   :  { %1149 = vmatprep.subr.bf16.mxu1 %v1271_v38 }
  0x23   :  { %683 = vmatmul.mubr.bf16.vlgmr.msra.gmra.mrb[0].mxu0 %v1263_v32 }
  0x24   :  { %724 = vmatmul.mubr.bf16.vlgmr.msra.gmra.mrb[0].mxu1 %v1266_v34  ;;  %1128 = vmatpush3.bf16.msra.mxu0 %v1270_v37 }
  0x25   :  { %1150 = vmatpush3.bf16.msra.mxu1 %v1272_v39  ;;  %1129 = vmatprep.subr.bf16.mxu0 %v1273_v40 }
  0x26   :  { %1151 = vmatprep.subr.bf16.mxu1 %v1275_v42  ;;  %764 = vmatprep.mubr.bf16.mxu0 %v1302_v4 }
  0x27   :  { %805 = vmatprep.mubr.bf16.mxu1 %v1306_v8 }
  0x28   :  { %1130 = vmatpush3.bf16.msra.mxu0 %v1274_v41 }
  0x29   :  { %1152 = vmatpush3.bf16.msra.mxu1 %v1276_v43  ;;  %1131 = vmatprep.subr.bf16.mxu0 %v1277_v44 }
  0x2a   :  { %1153 = vmatprep.subr.bf16.mxu1 %v1279_v46 }
  0x2c   :  { %1132 = vmatpush3.bf16.msra.mxu0 %v1278_v45 }
  0x2d   :  { %1154 = vmatpush3.bf16.msra.mxu1 %v1280_v47  ;;  %1133 = vmatprep.subr.bf16.mxu0 %v1281_v48 }
  0x2e   :  { %1155 = vmatprep.subr.bf16.mxu1 %v1283_v50 }
  0x30   :  { %1134 = vmatpush3.bf16.msra.mxu0 %v1282_v49 }
  0x31   :  { %1156 = vmatpush3.bf16.msra.mxu1 %v1284_v51  ;;  %1135 = vmatprep.subr.bf16.mxu0 %v1285_v52 }
  0x32   :  { %1157 = vmatprep.subr.bf16.mxu1 %v1287_v54 }
  0x34   :  { %1136 = vmatpush3.bf16.msra.mxu0 %v1286_v53 }
  0x35   :  { %1158 = vmatpush3.bf16.msra.mxu1 %v1288_v55  ;;  %1137 = vmatprep.subr.bf16.mxu0 %v1289_v56 }
  0x36   :  { %1159 = vmatprep.subr.bf16.mxu1 %v1291_v58 }
  0x38   :  { %1138 = vmatpush3.bf16.msra.mxu0 %v1290_v57 }
  0x39   :  { %1160 = vmatpush3.bf16.msra.mxu1 %v1292_v59  ;;  %1139 = vmatprep.subr.bf16.mxu0 %v1293_v60 }
  0x3a   :  { %1161 = vmatprep.subr.bf16.mxu1 %v1295_v62 }
  0x3c   :  { %1140 = vmatpush3.bf16.msra.mxu0 %v1294_v61 }
  0x3d   :  { %1162 = vmatpush3.bf16.msra.mxu1 %v1296_v63  ;;  %1141 = vmatprep.subr.bf16.mxu0 %v1297_v0 }
  0x3e   :  { %1163 = vmatprep.subr.bf16.mxu1 %v1299_v2 }
  0x40   :  { %1142 = vmatpush3.bf16.msra.mxu0 %v1298_v1  ;;  %v1075_v1 = vld [vmem:[%s1627_s1] sm:$0xff]  }
  0x41   :  { %1189 = vmatprep.subr.bf16.mxu0 %v1324_v6  ;;  %1164 = vmatpush3.bf16.msra.mxu1 %v1303_v5  ;;  %v1076_v2 = vunpack.c.l.bf16 %v1075_v1 }
  0x42   :  { %1209 = vmatprep.subr.bf16.mxu1 %v1324_v6 }
  0x43   :  { %765 = vmatmul.mubr.bf16.vlgmr.msra.gmra.mrb[4].mxu0 %v1300_v3  ;;  %v1077_v3 = vunpack.c.h.bf16 %v1075_v1 }
  0x44   :  { %1205 = vmatprep.mubr.msk.bf16.mxu0 %vm1325_vm0, %v1324_v6  ;;  %1190 = vmatpush3.bf16.msra.mxu0 %v1307_v9 }
  0x45   :  { %806 = vmatmul.mubr.bf16.vlgmr.msra.gmra.mrb[4].mxu1 %v1304_v7  ;;  %1191 = vmatprep.subr.bf16.mxu0 %v1324_v6 }
  0x46   :  { %1225 = vmatprep.mubr.msk.bf16.mxu1 %vm1325_vm0, %v1324_v6  ;;  %1210 = vmatpush3.bf16.msra.mxu1 %v1316_v18 }
  0x47   :  { %1211 = vmatprep.subr.bf16.mxu1 %v1324_v6 }
  0x48   :  { %1192 = vmatpush3.bf16.msra.mxu0 %v1308_v10 }
  0x49   :  { %1193 = vmatprep.subr.bf16.mxu0 %v1324_v6 }
  0x4a   :  { %1212 = vmatpush3.bf16.msra.mxu1 %v1317_v19 }
  0x4b   :  { %1213 = vmatprep.subr.bf16.mxu1 %v1324_v6 }
  0x4c   :  { %1194 = vmatpush3.bf16.msra.mxu0 %v1309_v11 }
  0x4d   :  { %1195 = vmatprep.subr.bf16.mxu0 %v1324_v6 }
  0x4e   :  { %1214 = vmatpush3.bf16.msra.mxu1 %v1318_v20 }
  0x4f   :  { %1215 = vmatprep.subr.bf16.mxu1 %v1324_v6 }
  0x50   :  { %1196 = vmatpush3.bf16.msra.mxu0 %v1310_v12 }
  0x51   :  { %1197 = vmatprep.subr.bf16.mxu0 %v1324_v6 }
  0x52   :  { %1216 = vmatpush3.bf16.msra.mxu1 %v1319_v21 }
  0x53   :  { %1217 = vmatprep.subr.bf16.mxu1 %v1324_v6 }
  0x54   :  { %1198 = vmatpush3.bf16.msra.mxu0 %v1311_v13 }
  0x55   :  { %1199 = vmatprep.subr.bf16.mxu0 %v1324_v6 }
  0x56   :  { %1218 = vmatpush3.bf16.msra.mxu1 %v1320_v22 }
  0x57   :  { %1219 = vmatprep.subr.bf16.mxu1 %v1324_v6 }
  0x58   :  { %1200 = vmatpush3.bf16.msra.mxu0 %v1312_v14 }
  0x59   :  { %1201 = vmatprep.subr.bf16.mxu0 %v1324_v6 }
  0x5a   :  { %1220 = vmatpush3.bf16.msra.mxu1 %v1321_v23 }
  0x5b   :  { %1221 = vmatprep.subr.bf16.mxu1 %v1324_v6 }
  0x5c   :  { %1202 = vmatpush3.bf16.msra.mxu0 %v1313_v15 }
  0x5d   :  { %1203 = vmatprep.subr.bf16.mxu0 %v1324_v6 }
  0x5e   :  { %1222 = vmatpush3.bf16.msra.mxu1 %v1322_v24 }
  0x5f   :  { %1223 = vmatprep.subr.bf16.mxu1 %v1324_v6 }
  0x60   :  { %1204 = vmatpush3.bf16.msra.mxu0 %v1314_v16 }
  0x62   :  { %1224 = vmatpush3.bf16.msra.mxu1 %v1323_v25 }
  0x63   :  { %1206 = vmatmul.mubr.bf16.vlgmr.msra.gmra.mrb[8].mxu0 %v1315_v17 }
  0xf6   :  { %v1099_v26 = vpop.f32.mrb[0].mxu0 }
  0xf7   :  { %v1121_v27 = vpop.f32.mrb[0].mxu1  ;;  %v1100_v28 = vpop.f32.mrb[1].mxu0 }
  0xf8   :  { %v1101_v29 = vadd.f32 %v1100_v28, %v1099_v26  ;;  %v1122_v30 = vpop.f32.mrb[1].mxu1  ;;  %v1102_v31 = vpop.f32.mrb[2].mxu0 }
  0xf9   :  { %v1123_v32 = vadd.f32 %v1122_v30, %v1121_v27  ;;  %v1124_v33 = vpop.f32.mrb[2].mxu1  ;;  %v1103_v34 = vpop.f32.mrb[3].mxu0 }
  0xfa   :  { %v1104_v35 = vadd.f32 %v1103_v34, %v1102_v31  ;;  %v1125_v36 = vpop.f32.mrb[3].mxu1 }
  0xfb   :  { %v726_v37 = vadd.f32 %v1123_v32, %v1101_v29  ;;  %v1126_v38 = vadd.f32 %v1125_v36, %v1124_v33 }
  0xfd   :  { %v729_v39 = vadd.f32 %v1126_v38, %v1104_v35 }
 0x116   :  { %v1143_v40 = vpop.f32.mrb[4].mxu0 }
 0x117   :  { %v1144_v41 = vpop.f32.mrb[5].mxu0 }
 0x118   :  { %v1145_v42 = vadd.f32 %v1144_v41, %v1143_v40  ;;  %v1146_v43 = vpop.f32.mrb[6].mxu0  ;;  %v1165_v44 = vpop.f32.mrb[4].mxu1 }
 0x119   :  { %v1147_v45 = vpop.f32.mrb[7].mxu0  ;;  %v1166_v48 = vpop.f32.mrb[5].mxu1 }
 0x11a   :  { %v767_v46 = vadd.f32 %v1145_v42, %v726_v37  ;;  %v1148_v47 = vadd.f32 %v1147_v45, %v1146_v43  ;;  %v1167_v49 = vadd.f32 %v1166_v48, %v1165_v44  ;;  %v1168_v50 = vpop.f32.mrb[6].mxu1 }
 0x11b   :  { %v1169_v52 = vpop.f32.mrb[7].mxu1 }
 0x11c   :  { %v770_v51 = vadd.f32 %v1148_v47, %v729_v39  ;;  %v1170_v53 = vadd.f32 %v1169_v52, %v1168_v50  ;;  %v808_v54 = vadd.f32 %v1167_v49, %v767_v46 }
 0x11e   :  { %v811_v55 = vadd.f32 %v1170_v53, %v770_v51 }
 0x136   :  { %v848_v56 = vpop.f32.mrb[8].mxu0 }
 0x137   :  { %v849_v57 = vadd.f32 %v848_v56, %v808_v54  ;;  %v1207_v58 = vpop.f32.mrb[9].mxu0 }
 0x138   :  { %v851_v59 = vpop.f32.mrb[10].mxu0 }
 0x139   :  { %v852_v60 = vadd.f32 %v851_v59, %v811_v55  ;;  %v1208_v61 = vpop.f32.mrb[11].mxu0  ;;  %v855_v62 = vmax.f32 %v849_v57, 0.0 }
 0x13b   :  { %v856_v63 = vmax.f32 %v852_v60, 0.0 }
 0x13d   :  { %v857_v0 = vpack.c.bf16 %v856_v63, %v855_v62 }
 0x13f   :  { %1226 = vmatmul.mubr.bf16.vlgmr.msra.gmra.mrb[8].mxu1 %v857_v0 }
 0x212   :  { %v960_v4 = vpop.f32.mrb[8].mxu1 }
 0x213   :  { %v1227_v5 = vpop.f32.mrb[9].mxu1  ;;  %v961_v7 = vadd.f32 %v1076_v2, %v960_v4 }
 0x214   :  { %v963_v6 = vpop.f32.mrb[10].mxu1 }
 0x215   :  { %v964_v8 = vadd.f32 %v1077_v3, %v963_v6  ;;  %v1228_v9 = vpop.f32.mrb[11].mxu1 }
 0x217   :  { %v1081_v10 = vpack.c.bf16 %v964_v8, %v961_v7 }
 0x219   :  { %1082 = vst [vmem:[%s1628_s4] sm:$0xff] %v1081_v10  }

// kernel: vqvae_forward.15
= control target key start
LH: loop header
LB: loop body
LE: loop exit
PB: predicated region body
PF: predicated region fallthrough
CT: control target
= control target key end

     0   :  { %s1177_s1 = inlined_call_operand.vmem [shape: bf16[1024,128], index: 1, kind: input, shape index: {}]   ;;  %s1178_s0 = inlined_call_operand.vmem [shape: bf16[8,1024], index: 0, kind: input, shape index: {}]   ;;  %s1179_s2 = inlined_call_operand.vmem [shape: bf16[8,128], index: 2, kind: output, shape index: {}]  }
   0x1   :  { %v883_v0 = vld [vmem:[%s1177_s1 + $0x40] sm:$0xff]   ;;  %v887_v4 = vld [vmem:[%s1177_s1 + $0x48] sm:$0xff]   ;;  %v891_v8 = vld [vmem:[%s1177_s1 + $0x50] sm:$0xff]  }
   0x2   :  { %v884_v1 = vld [vmem:[%s1177_s1 + $0xc0] sm:$0xff]   ;;  %795 = vmatprep.subr.bf16.mxu0 %v883_v0  ;;  %v888_v5 = vld [vmem:[%s1177_s1 + $0xc8] sm:$0xff]   ;;  %v892_v9 = vld [vmem:[%s1177_s1 + $0xd0] sm:$0xff]  }
   0x3   :  { %v885_v2 = vld [vmem:[%s1177_s1] sm:$0xff]   ;;  %817 = vmatprep.subr.bf16.mxu1 %v884_v1  ;;  %v889_v6 = vld [vmem:[%s1177_s1 + $0x8] sm:$0xff]   ;;  %v893_v10 = vld [vmem:[%s1177_s1 + $0x10] sm:$0xff]  }
   0x4   :  { %v886_v3 = vld [vmem:[%s1177_s1 + $0x80] sm:$0xff]   ;;  %796 = vmatpush3.bf16.msra.mxu0 %v885_v2  ;;  %v890_v7 = vld [vmem:[%s1177_s1 + $0x88] sm:$0xff]   ;;  %v894_v11 = vld [vmem:[%s1177_s1 + $0x90] sm:$0xff]  }
   0x5   :  { %818 = vmatpush3.bf16.msra.mxu1 %v886_v3  ;;  %797 = vmatprep.subr.bf16.mxu0 %v887_v4  ;;  %v895_v12 = vld [vmem:[%s1177_s1 + $0x58] sm:$0xff]   ;;  %v899_v16 = vld [vmem:[%s1177_s1 + $0x60] sm:$0xff]   ;;  %v903_v20 = vld [vmem:[%s1177_s1 + $0x68] sm:$0xff]  }
   0x6   :  { %819 = vmatprep.subr.bf16.mxu1 %v888_v5  ;;  %v896_v13 = vld [vmem:[%s1177_s1 + $0xd8] sm:$0xff]   ;;  %v900_v17 = vld [vmem:[%s1177_s1 + $0xe0] sm:$0xff]   ;;  %v904_v21 = vld [vmem:[%s1177_s1 + $0xe8] sm:$0xff]  }
   0x7   :  { %v897_v14 = vld [vmem:[%s1177_s1 + $0x18] sm:$0xff]   ;;  %v901_v18 = vld [vmem:[%s1177_s1 + $0x20] sm:$0xff]   ;;  %v905_v22 = vld [vmem:[%s1177_s1 + $0x28] sm:$0xff]  }
   0x8   :  { %798 = vmatpush3.bf16.msra.mxu0 %v889_v6  ;;  %v898_v15 = vld [vmem:[%s1177_s1 + $0x98] sm:$0xff]   ;;  %v902_v19 = vld [vmem:[%s1177_s1 + $0xa0] sm:$0xff]   ;;  %v906_v23 = vld [vmem:[%s1177_s1 + $0xa8] sm:$0xff]  }
   0x9   :  { %820 = vmatpush3.bf16.msra.mxu1 %v890_v7  ;;  %799 = vmatprep.subr.bf16.mxu0 %v891_v8  ;;  %v907_v24 = vld [vmem:[%s1177_s1 + $0x70] sm:$0xff]   ;;  %v911_v28 = vld [vmem:[%s1177_s1 + $0x78] sm:$0xff]   ;;  %v12_v32 = vld [vmem:[%s1178_s0] sm:$0xff] }
   0xa   :  { %821 = vmatprep.subr.bf16.mxu1 %v892_v9  ;;  %v908_v25 = vld [vmem:[%s1177_s1 + $0xf0] sm:$0xff]   ;;  %v912_v29 = vld [vmem:[%s1177_s1 + $0xf8] sm:$0xff]   ;;  %v13_v33 = vld [vmem:[%s1178_s0 + $0x8] sm:$0xff]  ;;  %v723_v34 = vcombine.low %v12_v32, %v12_v32  ;;  %v724_v35 = vcombine.high %v12_v32, %v12_v32 }
   0xb   :  { %v909_v26 = vld [vmem:[%s1177_s1 + $0x30] sm:$0xff]   ;;  %v913_v30 = vld [vmem:[%s1177_s1 + $0x38] sm:$0xff]   ;;  %v725_v36 = vcombine.low %v13_v33, %v13_v33  ;;  %v726_v37 = vcombine.high %v13_v33, %v13_v33  ;;  %v919_v38 = vld [vmem:[%s1177_s1 + $0x140] sm:$0xff]  }
   0xc   :  { %800 = vmatpush3.bf16.msra.mxu0 %v893_v10  ;;  %v910_v27 = vld [vmem:[%s1177_s1 + $0xb0] sm:$0xff]   ;;  %v914_v31 = vld [vmem:[%s1177_s1 + $0xb8] sm:$0xff]   ;;  %v920_v39 = vld [vmem:[%s1177_s1 + $0x1c0] sm:$0xff]   ;;  %588 = vmatprep.mubr.bf16.mxu0 %v724_v35 }
   0xd   :  { %822 = vmatpush3.bf16.msra.mxu1 %v894_v11  ;;  %801 = vmatprep.subr.bf16.mxu0 %v895_v12  ;;  %v921_v40 = vld [vmem:[%s1177_s1 + $0x100] sm:$0xff]   ;;  %v923_v42 = vld [vmem:[%s1177_s1 + $0x148] sm:$0xff]   ;;  %v927_v46 = vld [vmem:[%s1177_s1 + $0x150] sm:$0xff]  }
   0xe   :  { %823 = vmatprep.subr.bf16.mxu1 %v896_v13  ;;  %628 = vmatprep.mubr.bf16.mxu1 %v726_v37  ;;  %v922_v41 = vld [vmem:[%s1177_s1 + $0x180] sm:$0xff]   ;;  %v924_v43 = vld [vmem:[%s1177_s1 + $0x1c8] sm:$0xff]   ;;  %v928_v47 = vld [vmem:[%s1177_s1 + $0x1d0] sm:$0xff]  }
   0xf   :  { %v925_v44 = vld [vmem:[%s1177_s1 + $0x108] sm:$0xff]   ;;  %v929_v48 = vld [vmem:[%s1177_s1 + $0x110] sm:$0xff]   ;;  %v931_v50 = vld [vmem:[%s1177_s1 + $0x158] sm:$0xff]  }
  0x10   :  { %802 = vmatpush3.bf16.msra.mxu0 %v897_v14  ;;  %v926_v45 = vld [vmem:[%s1177_s1 + $0x188] sm:$0xff]   ;;  %v930_v49 = vld [vmem:[%s1177_s1 + $0x190] sm:$0xff]   ;;  %v932_v51 = vld [vmem:[%s1177_s1 + $0x1d8] sm:$0xff]  }
  0x11   :  { %824 = vmatpush3.bf16.msra.mxu1 %v898_v15  ;;  %803 = vmatprep.subr.bf16.mxu0 %v899_v16  ;;  %v933_v52 = vld [vmem:[%s1177_s1 + $0x118] sm:$0xff]   ;;  %v935_v54 = vld [vmem:[%s1177_s1 + $0x160] sm:$0xff]   ;;  %v939_v58 = vld [vmem:[%s1177_s1 + $0x168] sm:$0xff]  }
  0x12   :  { %825 = vmatprep.subr.bf16.mxu1 %v900_v17  ;;  %v934_v53 = vld [vmem:[%s1177_s1 + $0x198] sm:$0xff]   ;;  %v936_v55 = vld [vmem:[%s1177_s1 + $0x1e0] sm:$0xff]   ;;  %v940_v59 = vld [vmem:[%s1177_s1 + $0x1e8] sm:$0xff]  }
  0x13   :  { %v937_v56 = vld [vmem:[%s1177_s1 + $0x120] sm:$0xff]   ;;  %v941_v60 = vld [vmem:[%s1177_s1 + $0x128] sm:$0xff]   ;;  %v943_v62 = vld [vmem:[%s1177_s1 + $0x170] sm:$0xff]  }
  0x14   :  { %804 = vmatpush3.bf16.msra.mxu0 %v901_v18  ;;  %v938_v57 = vld [vmem:[%s1177_s1 + $0x1a0] sm:$0xff]   ;;  %v942_v61 = vld [vmem:[%s1177_s1 + $0x1a8] sm:$0xff]   ;;  %v944_v63 = vld [vmem:[%s1177_s1 + $0x1f0] sm:$0xff]  }
  0x15   :  { %826 = vmatpush3.bf16.msra.mxu1 %v902_v19  ;;  %805 = vmatprep.subr.bf16.mxu0 %v903_v20  ;;  %v945_v0 = vld [vmem:[%s1177_s1 + $0x130] sm:$0xff]   ;;  %v947_v2 = vld [vmem:[%s1177_s1 + $0x178] sm:$0xff]  }
  0x16   :  { %827 = vmatprep.subr.bf16.mxu1 %v904_v21  ;;  %v946_v1 = vld [vmem:[%s1177_s1 + $0x1b0] sm:$0xff]   ;;  %v948_v3 = vld [vmem:[%s1177_s1 + $0x1f8] sm:$0xff]  }
  0x17   :  { %v949_v4 = vld [vmem:[%s1177_s1 + $0x138] sm:$0xff]   ;;  %v14_v6 = vld [vmem:[%s1178_s0 + $0x10] sm:$0xff] }
  0x18   :  { %806 = vmatpush3.bf16.msra.mxu0 %v905_v22  ;;  %v950_v5 = vld [vmem:[%s1177_s1 + $0x1b8] sm:$0xff]   ;;  %v727_v7 = vcombine.low %v14_v6, %v14_v6  ;;  %v728_v8 = vcombine.high %v14_v6, %v14_v6 }
  0x19   :  { %828 = vmatpush3.bf16.msra.mxu1 %v906_v23  ;;  %807 = vmatprep.subr.bf16.mxu0 %v907_v24  ;;  %v15_v9 = vld [vmem:[%s1178_s0 + $0x18] sm:$0xff] }
  0x1a   :  { %829 = vmatprep.subr.bf16.mxu1 %v908_v25  ;;  %v729_v10 = vcombine.low %v15_v9, %v15_v9  ;;  %v730_v11 = vcombine.high %v15_v9, %v15_v9 }
  0x1c   :  { %808 = vmatpush3.bf16.msra.mxu0 %v909_v26 }
  0x1d   :  { %830 = vmatpush3.bf16.msra.mxu1 %v910_v27  ;;  %809 = vmatprep.subr.bf16.mxu0 %v911_v28 }
  0x1e   :  { %831 = vmatprep.subr.bf16.mxu1 %v912_v29 }
  0x20   :  { %810 = vmatpush3.bf16.msra.mxu0 %v913_v30 }
  0x21   :  { %832 = vmatpush3.bf16.msra.mxu1 %v914_v31  ;;  %839 = vmatprep.subr.bf16.mxu0 %v919_v38 }
  0x22   :  { %861 = vmatprep.subr.bf16.mxu1 %v920_v39 }
  0x23   :  { %589 = vmatmul.mubr.bf16.vlgmr.msra.gmra.mrb[0].mxu0 %v723_v34 }
  0x24   :  { %629 = vmatmul.mubr.bf16.vlgmr.msra.gmra.mrb[0].mxu1 %v725_v36  ;;  %840 = vmatpush3.bf16.msra.mxu0 %v921_v40 }
  0x25   :  { %862 = vmatpush3.bf16.msra.mxu1 %v922_v41  ;;  %841 = vmatprep.subr.bf16.mxu0 %v923_v42 }
  0x26   :  { %863 = vmatprep.subr.bf16.mxu1 %v924_v43  ;;  %668 = vmatprep.mubr.bf16.mxu0 %v728_v8 }
  0x27   :  { %708 = vmatprep.mubr.bf16.mxu1 %v730_v11 }
  0x28   :  { %842 = vmatpush3.bf16.msra.mxu0 %v925_v44 }
  0x29   :  { %864 = vmatpush3.bf16.msra.mxu1 %v926_v45  ;;  %843 = vmatprep.subr.bf16.mxu0 %v927_v46 }
  0x2a   :  { %865 = vmatprep.subr.bf16.mxu1 %v928_v47 }
  0x2c   :  { %844 = vmatpush3.bf16.msra.mxu0 %v929_v48 }
  0x2d   :  { %866 = vmatpush3.bf16.msra.mxu1 %v930_v49  ;;  %845 = vmatprep.subr.bf16.mxu0 %v931_v50 }
  0x2e   :  { %867 = vmatprep.subr.bf16.mxu1 %v932_v51 }
  0x30   :  { %846 = vmatpush3.bf16.msra.mxu0 %v933_v52 }
  0x31   :  { %868 = vmatpush3.bf16.msra.mxu1 %v934_v53  ;;  %847 = vmatprep.subr.bf16.mxu0 %v935_v54 }
  0x32   :  { %869 = vmatprep.subr.bf16.mxu1 %v936_v55 }
  0x34   :  { %848 = vmatpush3.bf16.msra.mxu0 %v937_v56 }
  0x35   :  { %870 = vmatpush3.bf16.msra.mxu1 %v938_v57  ;;  %849 = vmatprep.subr.bf16.mxu0 %v939_v58 }
  0x36   :  { %871 = vmatprep.subr.bf16.mxu1 %v940_v59 }
  0x38   :  { %850 = vmatpush3.bf16.msra.mxu0 %v941_v60 }
  0x39   :  { %872 = vmatpush3.bf16.msra.mxu1 %v942_v61  ;;  %851 = vmatprep.subr.bf16.mxu0 %v943_v62 }
  0x3a   :  { %873 = vmatprep.subr.bf16.mxu1 %v944_v63 }
  0x3c   :  { %852 = vmatpush3.bf16.msra.mxu0 %v945_v0 }
  0x3d   :  { %874 = vmatpush3.bf16.msra.mxu1 %v946_v1  ;;  %853 = vmatprep.subr.bf16.mxu0 %v947_v2 }
  0x3e   :  { %875 = vmatprep.subr.bf16.mxu1 %v948_v3 }
  0x40   :  { %854 = vmatpush3.bf16.msra.mxu0 %v949_v4 }
  0x41   :  { %876 = vmatpush3.bf16.msra.mxu1 %v950_v5 }
  0x43   :  { %669 = vmatmul.mubr.bf16.vlgmr.msra.gmra.mrb[4].mxu0 %v727_v7 }
  0x44   :  { %709 = vmatmul.mubr.bf16.vlgmr.msra.gmra.mrb[4].mxu1 %v729_v10 }
  0xf6   :  { %v811_v12 = vpop.f32.mrb[0].mxu0 }
  0xf7   :  { %v833_v13 = vpop.f32.mrb[0].mxu1  ;;  %v812_v14 = vpop.f32.mrb[1].mxu0 }
  0xf8   :  { %v834_v15 = vpop.f32.mrb[1].mxu1  ;;  %v813_v16 = vadd.f32 %v812_v14, %v811_v12  ;;  %v814_v18 = vpop.f32.mrb[2].mxu0 }
  0xf9   :  { %v835_v17 = vadd.f32 %v834_v15, %v833_v13  ;;  %v836_v19 = vpop.f32.mrb[2].mxu1  ;;  %v815_v20 = vpop.f32.mrb[3].mxu0 }
  0xfa   :  { %v837_v21 = vpop.f32.mrb[3].mxu1 }
  0xfb   :  { %v631_v22 = vadd.f32 %v835_v17, %v813_v16 }
 0x116   :  { %v855_v23 = vpop.f32.mrb[4].mxu0 }
 0x117   :  { %v877_v24 = vpop.f32.mrb[4].mxu1  ;;  %v856_v25 = vpop.f32.mrb[5].mxu0 }
 0x118   :  { %v878_v26 = vpop.f32.mrb[5].mxu1  ;;  %v857_v27 = vadd.f32 %v856_v25, %v855_v23  ;;  %v858_v29 = vpop.f32.mrb[6].mxu0 }
 0x119   :  { %v879_v28 = vadd.f32 %v878_v26, %v877_v24  ;;  %v880_v30 = vpop.f32.mrb[6].mxu1  ;;  %v859_v31 = vpop.f32.mrb[7].mxu0 }
 0x11a   :  { %v881_v32 = vpop.f32.mrb[7].mxu1  ;;  %v671_v33 = vadd.f32 %v857_v27, %v631_v22 }
 0x11c   :  { %v711_v34 = vadd.f32 %v879_v28, %v671_v33 }
 0x11e   :  { %v716_v35 = vmax.f32 %v711_v34, 0.0 }
 0x120   :  { %v717_v36 = vpack.c.bf16 %v716_v35, %v716_v35 }
 0x122   :  { %718 = vst [vmem:[%s1179_s2] sm:$0xf] %v717_v36 }

// kernel: vqvae_forward.16
= control target key start
LH: loop header
LB: loop body
LE: loop exit
PB: predicated region body
PF: predicated region fallthrough
CT: control target
= control target key end

     0   :  { %vm1272_vm0 = vmmov 0   ;;  %s1559_s2 = inlined_call_operand.vmem [shape: bf16[1152,128], index: 2, kind: input, shape index: {}]   ;;  %s1560_s0 = inlined_call_operand.vmem [shape: bf16[8,1152], index: 0, kind: input, shape index: {}]   ;;  %s1561_s3 = inlined_call_operand.vmem [shape: bf16[128,128], index: 3, kind: input, shape index: {}]   ;;  %s1562_s1 = inlined_call_operand.vmem [shape: bf16[8,128], index: 1, kind: input, shape index: {}]   ;;  %s1563_s4 = inlined_call_operand.vmem [shape: bf16[8,128], index: 4, kind: output, shape index: {}]  }
   0x1   :  { %v1182_v0 = vld [vmem:[%s1559_s2 + $0x40] sm:$0xff]   ;;  %v1186_v4 = vld [vmem:[%s1559_s2 + $0x48] sm:$0xff]   ;;  %v1190_v8 = vld [vmem:[%s1559_s2 + $0x50] sm:$0xff]  }
   0x2   :  { %v1183_v1 = vld [vmem:[%s1559_s2 + $0xc0] sm:$0xff]   ;;  %1034 = vmatprep.subr.bf16.mxu0 %v1182_v0  ;;  %v1187_v5 = vld [vmem:[%s1559_s2 + $0xc8] sm:$0xff]   ;;  %v1191_v9 = vld [vmem:[%s1559_s2 + $0xd0] sm:$0xff]  }
   0x3   :  { %v1184_v2 = vld [vmem:[%s1559_s2] sm:$0xff]   ;;  %1056 = vmatprep.subr.bf16.mxu1 %v1183_v1  ;;  %v1188_v6 = vld [vmem:[%s1559_s2 + $0x8] sm:$0xff]   ;;  %v1192_v10 = vld [vmem:[%s1559_s2 + $0x10] sm:$0xff]  }
   0x4   :  { %v1185_v3 = vld [vmem:[%s1559_s2 + $0x80] sm:$0xff]   ;;  %1035 = vmatpush3.bf16.msra.mxu0 %v1184_v2  ;;  %v1189_v7 = vld [vmem:[%s1559_s2 + $0x88] sm:$0xff]   ;;  %v1193_v11 = vld [vmem:[%s1559_s2 + $0x90] sm:$0xff]  }
   0x5   :  { %1057 = vmatpush3.bf16.msra.mxu1 %v1185_v3  ;;  %1036 = vmatprep.subr.bf16.mxu0 %v1186_v4  ;;  %v1194_v12 = vld [vmem:[%s1559_s2 + $0x58] sm:$0xff]   ;;  %v1198_v16 = vld [vmem:[%s1559_s2 + $0x60] sm:$0xff]   ;;  %v1202_v20 = vld [vmem:[%s1559_s2 + $0x68] sm:$0xff]  }
   0x6   :  { %1058 = vmatprep.subr.bf16.mxu1 %v1187_v5  ;;  %v1195_v13 = vld [vmem:[%s1559_s2 + $0xd8] sm:$0xff]   ;;  %v1199_v17 = vld [vmem:[%s1559_s2 + $0xe0] sm:$0xff]   ;;  %v1203_v21 = vld [vmem:[%s1559_s2 + $0xe8] sm:$0xff]  }
   0x7   :  { %v1196_v14 = vld [vmem:[%s1559_s2 + $0x18] sm:$0xff]   ;;  %v1200_v18 = vld [vmem:[%s1559_s2 + $0x20] sm:$0xff]   ;;  %v1204_v22 = vld [vmem:[%s1559_s2 + $0x28] sm:$0xff]  }
   0x8   :  { %1037 = vmatpush3.bf16.msra.mxu0 %v1188_v6  ;;  %v1197_v15 = vld [vmem:[%s1559_s2 + $0x98] sm:$0xff]   ;;  %v1201_v19 = vld [vmem:[%s1559_s2 + $0xa0] sm:$0xff]   ;;  %v1205_v23 = vld [vmem:[%s1559_s2 + $0xa8] sm:$0xff]  }
   0x9   :  { %1059 = vmatpush3.bf16.msra.mxu1 %v1189_v7  ;;  %1038 = vmatprep.subr.bf16.mxu0 %v1190_v8  ;;  %v1206_v24 = vld [vmem:[%s1559_s2 + $0x70] sm:$0xff]   ;;  %v1210_v28 = vld [vmem:[%s1559_s2 + $0x78] sm:$0xff]   ;;  %v18_v32 = vld [vmem:[%s1560_s0] sm:$0xff] }
   0xa   :  { %1060 = vmatprep.subr.bf16.mxu1 %v1191_v9  ;;  %v1207_v25 = vld [vmem:[%s1559_s2 + $0xf0] sm:$0xff]   ;;  %v1211_v29 = vld [vmem:[%s1559_s2 + $0xf8] sm:$0xff]   ;;  %v19_v33 = vld [vmem:[%s1560_s0 + $0x8] sm:$0xff]  ;;  %v945_v34 = vcombine.low %v18_v32, %v18_v32  ;;  %v946_v35 = vcombine.high %v18_v32, %v18_v32 }
   0xb   :  { %v1208_v26 = vld [vmem:[%s1559_s2 + $0x30] sm:$0xff]   ;;  %v1212_v30 = vld [vmem:[%s1559_s2 + $0x38] sm:$0xff]   ;;  %v947_v36 = vcombine.low %v19_v33, %v19_v33  ;;  %v948_v37 = vcombine.high %v19_v33, %v19_v33  ;;  %v1218_v38 = vld [vmem:[%s1559_s2 + $0x140] sm:$0xff]  }
   0xc   :  { %1039 = vmatpush3.bf16.msra.mxu0 %v1192_v10  ;;  %v1209_v27 = vld [vmem:[%s1559_s2 + $0xb0] sm:$0xff]   ;;  %v1213_v31 = vld [vmem:[%s1559_s2 + $0xb8] sm:$0xff]   ;;  %v1219_v39 = vld [vmem:[%s1559_s2 + $0x100] sm:$0xff]   ;;  %663 = vmatprep.mubr.bf16.mxu0 %v946_v35 }
   0xd   :  { %1061 = vmatpush3.bf16.msra.mxu1 %v1193_v11  ;;  %1040 = vmatprep.subr.bf16.mxu0 %v1194_v12  ;;  %v1220_v40 = vld [vmem:[%s1559_s2 + $0x1c0] sm:$0xff]   ;;  %v1222_v42 = vld [vmem:[%s1559_s2 + $0x148] sm:$0xff]   ;;  %v1226_v46 = vld [vmem:[%s1559_s2 + $0x150] sm:$0xff]  }
   0xe   :  { %1062 = vmatprep.subr.bf16.mxu1 %v1195_v13  ;;  %703 = vmatprep.mubr.bf16.mxu1 %v948_v37  ;;  %v1221_v41 = vld [vmem:[%s1559_s2 + $0x180] sm:$0xff]   ;;  %v1223_v43 = vld [vmem:[%s1559_s2 + $0x108] sm:$0xff]   ;;  %v1227_v47 = vld [vmem:[%s1559_s2 + $0x110] sm:$0xff]   ;;  %v1271_v13 = vmov 0.0  }
   0xf   :  { %v1224_v44 = vld [vmem:[%s1559_s2 + $0x1c8] sm:$0xff]   ;;  %v1228_v48 = vld [vmem:[%s1559_s2 + $0x1d0] sm:$0xff]   ;;  %v1230_v50 = vld [vmem:[%s1559_s2 + $0x158] sm:$0xff]  }
  0x10   :  { %1041 = vmatpush3.bf16.msra.mxu0 %v1196_v14  ;;  %v1225_v45 = vld [vmem:[%s1559_s2 + $0x188] sm:$0xff]   ;;  %v1229_v49 = vld [vmem:[%s1559_s2 + $0x190] sm:$0xff]   ;;  %v1231_v51 = vld [vmem:[%s1559_s2 + $0x118] sm:$0xff]  }
  0x11   :  { %1063 = vmatpush3.bf16.msra.mxu1 %v1197_v15  ;;  %1042 = vmatprep.subr.bf16.mxu0 %v1198_v16  ;;  %v1232_v52 = vld [vmem:[%s1559_s2 + $0x1d8] sm:$0xff]   ;;  %v1234_v54 = vld [vmem:[%s1559_s2 + $0x160] sm:$0xff]   ;;  %v1238_v58 = vld [vmem:[%s1559_s2 + $0x168] sm:$0xff]  }
  0x12   :  { %1064 = vmatprep.subr.bf16.mxu1 %v1199_v17  ;;  %v1233_v53 = vld [vmem:[%s1559_s2 + $0x198] sm:$0xff]   ;;  %v1235_v55 = vld [vmem:[%s1559_s2 + $0x120] sm:$0xff]   ;;  %v1239_v59 = vld [vmem:[%s1559_s2 + $0x128] sm:$0xff]  }
  0x13   :  { %v1236_v56 = vld [vmem:[%s1559_s2 + $0x1e0] sm:$0xff]   ;;  %v1240_v60 = vld [vmem:[%s1559_s2 + $0x1e8] sm:$0xff]   ;;  %v1242_v62 = vld [vmem:[%s1559_s2 + $0x170] sm:$0xff]  }
  0x14   :  { %1043 = vmatpush3.bf16.msra.mxu0 %v1200_v18  ;;  %v1237_v57 = vld [vmem:[%s1559_s2 + $0x1a0] sm:$0xff]   ;;  %v1241_v61 = vld [vmem:[%s1559_s2 + $0x1a8] sm:$0xff]   ;;  %v1243_v63 = vld [vmem:[%s1559_s2 + $0x130] sm:$0xff]  }
  0x15   :  { %1065 = vmatpush3.bf16.msra.mxu1 %v1201_v19  ;;  %1044 = vmatprep.subr.bf16.mxu0 %v1202_v20  ;;  %v1244_v0 = vld [vmem:[%s1559_s2 + $0x1f0] sm:$0xff]   ;;  %v1246_v2 = vld [vmem:[%s1559_s2 + $0x178] sm:$0xff]   ;;  %v1254_v12 = vld [vmem:[%s1559_s2 + $0x200] sm:$0xff]  }
  0x16   :  { %1066 = vmatprep.subr.bf16.mxu1 %v1203_v21  ;;  %v1245_v1 = vld [vmem:[%s1559_s2 + $0x1b0] sm:$0xff]   ;;  %v1247_v3 = vld [vmem:[%s1559_s2 + $0x138] sm:$0xff]   ;;  %v1255_v14 = vld [vmem:[%s1559_s2 + $0x208] sm:$0xff]  }
  0x17   :  { %v1248_v4 = vld [vmem:[%s1559_s2 + $0x1f8] sm:$0xff]   ;;  %v20_v5 = vld [vmem:[%s1560_s0 + $0x10] sm:$0xff]  ;;  %v1258_v17 = vld [vmem:[%s1559_s2 + $0x220] sm:$0xff]  }
  0x18   :  { %1045 = vmatpush3.bf16.msra.mxu0 %v1204_v22  ;;  %v950_v6 = vcombine.high %v20_v5, %v20_v5  ;;  %v1251_v7 = vld [vmem:[%s1559_s2 + $0x1b8] sm:$0xff]   ;;  %v949_v8 = vcombine.low %v20_v5, %v20_v5  ;;  %v1256_v15 = vld [vmem:[%s1559_s2 + $0x210] sm:$0xff]   ;;  %v1259_v18 = vld [vmem:[%s1559_s2 + $0x228] sm:$0xff]  }
  0x19   :  { %1067 = vmatpush3.bf16.msra.mxu1 %v1205_v23  ;;  %1046 = vmatprep.subr.bf16.mxu0 %v1206_v24  ;;  %v21_v9 = vld [vmem:[%s1560_s0 + $0x18] sm:$0xff]  ;;  %v1260_v19 = vld [vmem:[%s1559_s2 + $0x230] sm:$0xff]   ;;  %v1262_v21 = vld [vmem:[%s1560_s0 + $0x20] ss:$0 sps:$4 sm:$0xff]  }
  0x1a   :  { %1068 = vmatprep.subr.bf16.mxu1 %v1207_v25  ;;  %v951_v10 = vcombine.low %v21_v9, %v21_v9  ;;  %v952_v11 = vcombine.high %v21_v9, %v21_v9  ;;  %v1257_v16 = vld [vmem:[%s1559_s2 + $0x218] sm:$0xff]   ;;  %v1263_v22 = vld [vmem:[%s1561_s3] sm:$0xff]   ;;  %v1264_v23 = vld [vmem:[%s1561_s3 + $0x8] sm:$0xff]  }
  0x1b   :  { %v1261_v20 = vld [vmem:[%s1559_s2 + $0x238] sm:$0xff]   ;;  %v1265_v24 = vld [vmem:[%s1561_s3 + $0x10] sm:$0xff]  }
  0x1c   :  { %1047 = vmatpush3.bf16.msra.mxu0 %v1208_v26  ;;  %v1266_v25 = vld [vmem:[%s1561_s3 + $0x18] sm:$0xff]   ;;  %v1267_v26 = vld [vmem:[%s1561_s3 + $0x20] sm:$0xff]  }
  0x1d   :  { %1069 = vmatpush3.bf16.msra.mxu1 %v1209_v27  ;;  %1048 = vmatprep.subr.bf16.mxu0 %v1210_v28  ;;  %v1268_v27 = vld [vmem:[%s1561_s3 + $0x28] sm:$0xff]   ;;  %v1269_v28 = vld [vmem:[%s1561_s3 + $0x30] sm:$0xff]  }
  0x1e   :  { %1070 = vmatprep.subr.bf16.mxu1 %v1211_v29  ;;  %v1270_v29 = vld [vmem:[%s1561_s3 + $0x38] sm:$0xff]  }
  0x20   :  { %1049 = vmatpush3.bf16.msra.mxu0 %v1212_v30 }
  0x21   :  { %1071 = vmatpush3.bf16.msra.mxu1 %v1213_v31  ;;  %1078 = vmatprep.subr.bf16.mxu0 %v1218_v38 }
  0x22   :  { %1100 = vmatprep.subr.bf16.mxu1 %v1220_v40 }
  0x23   :  { %664 = vmatmul.mubr.bf16.vlgmr.msra.gmra.mrb[0].mxu0 %v945_v34 }
  0x24   :  { %704 = vmatmul.mubr.bf16.vlgmr.msra.gmra.mrb[0].mxu1 %v947_v36  ;;  %1079 = vmatpush3.bf16.msra.mxu0 %v1219_v39 }
  0x25   :  { %1101 = vmatpush3.bf16.msra.mxu1 %v1221_v41  ;;  %1080 = vmatprep.subr.bf16.mxu0 %v1222_v42 }
  0x26   :  { %1102 = vmatprep.subr.bf16.mxu1 %v1224_v44  ;;  %743 = vmatprep.mubr.bf16.mxu0 %v950_v6 }
  0x27   :  { %783 = vmatprep.mubr.bf16.mxu1 %v952_v11 }
  0x28   :  { %1081 = vmatpush3.bf16.msra.mxu0 %v1223_v43 }
  0x29   :  { %1103 = vmatpush3.bf16.msra.mxu1 %v1225_v45  ;;  %1082 = vmatprep.subr.bf16.mxu0 %v1226_v46 }
  0x2a   :  { %1104 = vmatprep.subr.bf16.mxu1 %v1228_v48 }
  0x2c   :  { %1083 = vmatpush3.bf16.msra.mxu0 %v1227_v47 }
  0x2d   :  { %1105 = vmatpush3.bf16.msra.mxu1 %v1229_v49  ;;  %1084 = vmatprep.subr.bf16.mxu0 %v1230_v50 }
  0x2e   :  { %1106 = vmatprep.subr.bf16.mxu1 %v1232_v52 }
  0x30   :  { %1085 = vmatpush3.bf16.msra.mxu0 %v1231_v51 }
  0x31   :  { %1107 = vmatpush3.bf16.msra.mxu1 %v1233_v53  ;;  %1086 = vmatprep.subr.bf16.mxu0 %v1234_v54 }
  0x32   :  { %1108 = vmatprep.subr.bf16.mxu1 %v1236_v56 }
  0x34   :  { %1087 = vmatpush3.bf16.msra.mxu0 %v1235_v55 }
  0x35   :  { %1109 = vmatpush3.bf16.msra.mxu1 %v1237_v57  ;;  %1088 = vmatprep.subr.bf16.mxu0 %v1238_v58 }
  0x36   :  { %1110 = vmatprep.subr.bf16.mxu1 %v1240_v60  ;;  %v849_v60 = vld [vmem:[%s1562_s1] sm:$0xf] }
  0x38   :  { %1089 = vmatpush3.bf16.msra.mxu0 %v1239_v59 }
  0x39   :  { %1111 = vmatpush3.bf16.msra.mxu1 %v1241_v61  ;;  %1090 = vmatprep.subr.bf16.mxu0 %v1242_v62  ;;  %v850_v61 = vunpack.c.l.bf16 %v849_v60 }
  0x3a   :  { %1112 = vmatprep.subr.bf16.mxu1 %v1244_v0 }
  0x3c   :  { %1091 = vmatpush3.bf16.msra.mxu0 %v1243_v63 }
  0x3d   :  { %1113 = vmatpush3.bf16.msra.mxu1 %v1245_v1  ;;  %1092 = vmatprep.subr.bf16.mxu0 %v1246_v2 }
  0x3e   :  { %1114 = vmatprep.subr.bf16.mxu1 %v1248_v4 }
  0x40   :  { %1093 = vmatpush3.bf16.msra.mxu0 %v1247_v3 }
  0x41   :  { %1115 = vmatpush3.bf16.msra.mxu1 %v1251_v7  ;;  %1140 = vmatprep.subr.bf16.mxu0 %v1271_v13 }
  0x42   :  { %1160 = vmatprep.subr.bf16.mxu1 %v1271_v13 }
  0x43   :  { %744 = vmatmul.mubr.bf16.vlgmr.msra.gmra.mrb[4].mxu0 %v949_v8 }
  0x44   :  { %1141 = vmatpush3.bf16.msra.mxu0 %v1254_v12  ;;  %784 = vmatmul.mubr.bf16.vlgmr.msra.gmra.mrb[4].mxu1 %v951_v10 }
  0x45   :  { %1142 = vmatprep.subr.bf16.mxu0 %v1271_v13  ;;  %1156 = vmatprep.mubr.msk.bf16.mxu0 %vm1272_vm0, %v1271_v13 }
  0x46   :  { %1176 = vmatprep.mubr.msk.bf16.mxu1 %vm1272_vm0, %v1271_v13  ;;  %1161 = vmatpush3.bf16.msra.mxu1 %v1263_v22 }
  0x47   :  { %1162 = vmatprep.subr.bf16.mxu1 %v1271_v13 }
  0x48   :  { %1143 = vmatpush3.bf16.msra.mxu0 %v1255_v14 }
  0x49   :  { %1144 = vmatprep.subr.bf16.mxu0 %v1271_v13 }
  0x4a   :  { %1163 = vmatpush3.bf16.msra.mxu1 %v1264_v23 }
  0x4b   :  { %1164 = vmatprep.subr.bf16.mxu1 %v1271_v13 }
  0x4c   :  { %1145 = vmatpush3.bf16.msra.mxu0 %v1256_v15 }
  0x4d   :  { %1146 = vmatprep.subr.bf16.mxu0 %v1271_v13 }
  0x4e   :  { %1165 = vmatpush3.bf16.msra.mxu1 %v1265_v24 }
  0x4f   :  { %1166 = vmatprep.subr.bf16.mxu1 %v1271_v13 }
  0x50   :  { %1147 = vmatpush3.bf16.msra.mxu0 %v1257_v16 }
  0x51   :  { %1148 = vmatprep.subr.bf16.mxu0 %v1271_v13 }
  0x52   :  { %1167 = vmatpush3.bf16.msra.mxu1 %v1266_v25 }
  0x53   :  { %1168 = vmatprep.subr.bf16.mxu1 %v1271_v13 }
  0x54   :  { %1149 = vmatpush3.bf16.msra.mxu0 %v1258_v17 }
  0x55   :  { %1150 = vmatprep.subr.bf16.mxu0 %v1271_v13 }
  0x56   :  { %1169 = vmatpush3.bf16.msra.mxu1 %v1267_v26 }
  0x57   :  { %1170 = vmatprep.subr.bf16.mxu1 %v1271_v13 }
  0x58   :  { %1151 = vmatpush3.bf16.msra.mxu0 %v1259_v18 }
  0x59   :  { %1152 = vmatprep.subr.bf16.mxu0 %v1271_v13 }
  0x5a   :  { %1171 = vmatpush3.bf16.msra.mxu1 %v1268_v27 }
  0x5b   :  { %1172 = vmatprep.subr.bf16.mxu1 %v1271_v13 }
  0x5c   :  { %1153 = vmatpush3.bf16.msra.mxu0 %v1260_v19 }
  0x5d   :  { %1154 = vmatprep.subr.bf16.mxu0 %v1271_v13 }
  0x5e   :  { %1173 = vmatpush3.bf16.msra.mxu1 %v1269_v28 }
  0x5f   :  { %1174 = vmatprep.subr.bf16.mxu1 %v1271_v13 }
  0x60   :  { %1155 = vmatpush3.bf16.msra.mxu0 %v1261_v20 }
  0x62   :  { %1175 = vmatpush3.bf16.msra.mxu1 %v1270_v29 }
  0x63   :  { %1157 = vmatmul.mubr.bf16.vlgmr.msra.gmra.mrb[8].mxu0 %v1262_v21 }
  0xf6   :  { %v1050_v30 = vpop.f32.mrb[0].mxu0 }
  0xf7   :  { %v1072_v31 = vpop.f32.mrb[0].mxu1  ;;  %v1051_v32 = vpop.f32.mrb[1].mxu0 }
  0xf8   :  { %v1073_v33 = vpop.f32.mrb[1].mxu1  ;;  %v1052_v34 = vadd.f32 %v1051_v32, %v1050_v30  ;;  %v1053_v36 = vpop.f32.mrb[2].mxu0 }
  0xf9   :  { %v1074_v35 = vadd.f32 %v1073_v33, %v1072_v31  ;;  %v1075_v37 = vpop.f32.mrb[2].mxu1  ;;  %v1054_v38 = vpop.f32.mrb[3].mxu0 }
  0xfa   :  { %v1076_v39 = vpop.f32.mrb[3].mxu1 }
  0xfb   :  { %v706_v40 = vadd.f32 %v1074_v35, %v1052_v34 }
 0x116   :  { %v1094_v41 = vpop.f32.mrb[4].mxu0 }
 0x117   :  { %v1095_v42 = vpop.f32.mrb[5].mxu0  ;;  %v1116_v43 = vpop.f32.mrb[4].mxu1 }
 0x118   :  { %v1096_v44 = vadd.f32 %v1095_v42, %v1094_v41  ;;  %v1097_v45 = vpop.f32.mrb[6].mxu0  ;;  %v1117_v46 = vpop.f32.mrb[5].mxu1 }
 0x119   :  { %v1098_v47 = vpop.f32.mrb[7].mxu0  ;;  %v1118_v48 = vadd.f32 %v1117_v46, %v1116_v43  ;;  %v1119_v49 = vpop.f32.mrb[6].mxu1 }
 0x11a   :  { %v746_v50 = vadd.f32 %v1096_v44, %v706_v40  ;;  %v1120_v51 = vpop.f32.mrb[7].mxu1 }
 0x11c   :  { %v786_v52 = vadd.f32 %v1118_v48, %v746_v50 }
 0x136   :  { %v825_v53 = vpop.f32.mrb[8].mxu0 }
 0x137   :  { %v826_v54 = vadd.f32 %v825_v53, %v786_v52  ;;  %v1158_v55 = vpop.f32.mrb[9].mxu0 }
 0x138   :  { %v828_v56 = vpop.f32.mrb[10].mxu0 }
 0x139   :  { %v831_v57 = vmax.f32 %v826_v54, 0.0  ;;  %v1159_v58 = vpop.f32.mrb[11].mxu0 }
 0x13b   :  { %v832_v59 = vpack.c.bf16 %v831_v57, %v831_v57 }
 0x13d   :  { %1177 = vmatmul.mubr.bf16.vlgmr.msra.gmra.mrb[8].mxu1 %v832_v59 }
 0x210   :  { %v933_v62 = vpop.f32.mrb[8].mxu1 }
 0x211   :  { %v934_v63 = vadd.f32 %v933_v62, %v850_v61  ;;  %v1178_v0 = vpop.f32.mrb[9].mxu1 }
 0x212   :  { %v936_v1 = vpop.f32.mrb[10].mxu1 }
 0x213   :  { %v939_v2 = vpack.c.bf16 %v934_v63, %v934_v63  ;;  %v1179_v3 = vpop.f32.mrb[11].mxu1 }
 0x215   :  { %940 = vst [vmem:[%s1563_s4] sm:$0xf] %v939_v2 }

// kernel: vqvae_forward.19
= control target key start
LH: loop header
LB: loop body
LE: loop exit
PB: predicated region body
PF: predicated region fallthrough
CT: control target
= control target key end

     0   :  { %vm62_vm0 = vcmask 261120   ;;  %s760_s0 = inlined_call_operand.vmem [shape: bf16[32,32], index: 0, kind: input, shape index: {}]   ;;  %s761_s1 = inlined_call_operand.vmem [shape: f32[128,32], index: 1, kind: input, shape index: {}]   ;;  %s762_s2 = inlined_call_operand.vmem [shape: f32[1,128], index: 2, kind: input, shape index: {}]   ;;  %s763_s3 = inlined_call_operand.vmem [shape: f32[32,32], index: 3, kind: output, shape index: {0}]   ;;  %s764_s4 = inlined_call_operand.vmem [shape: f32[1,8,128], index: 4, kind: output, shape index: {1}]   ;;  %s765_s5 = inlined_call_operand.hbm [shape: f32[1,1,1], index: 5, kind: output, shape index: {2}]  }
   0x1   :  { %v27_v0 = vld [vmem:[%s761_s1] sm:$0xff]  ;;  %v28_v1 = vld [vmem:[%s761_s1 + $0x8] sm:$0xff]  ;;  %v29_v2 = vld [vmem:[%s761_s1 + $0x10] sm:$0xff] }
   0x2   :  { %v44_v3 = vpack.c.bf16 %v28_v1, %v27_v0  ;;  %v30_v4 = vld [vmem:[%s761_s1 + $0x18] sm:$0xff]  ;;  %v31_v7 = vld [vmem:[%s761_s1 + $0x20] sm:$0xff]  ;;  %v32_v8 = vld [vmem:[%s761_s1 + $0x28] sm:$0xff] }
   0x3   :  { %v45_v5 = vpack.c.bf16 %v30_v4, %v29_v2  ;;  %v654_v9 = vld [vmem:[%s760_s0] sm:$0xff]  }
   0x4   :  { %558 = vmatprep.subr.msk.bf16.mxu0 %vm62_vm0, %v44_v3  ;;  %v70_v6 = vsel %vm62_vm0, %v44_v3, 0  ;;  %527 = vmatprep.subr.bf16.mxu1 %v44_v3 }
   0x5   :  { %469 = vmatpush3.bf16.xpose.msra.mxu0 %v70_v6  ;;  %529 = vmatpush3.bf16.msra.mxu1 %v44_v3 }
   0x6   :  { %559 = vmatprep.subr.msk.bf16.mxu0 %vm62_vm0, %v45_v5  ;;  %531 = vmatprep.subr.bf16.mxu1 %v45_v5 }
   0x7   :  { %11 = vsyncpa [#allocation3], 0  ;;  %v46_v10 = vpack.c.bf16 %v32_v8, %v31_v7  ;;  %v33_v11 = vld [vmem:[%s761_s1 + $0x30] sm:$0xff]  ;;  %v34_v12 = vld [vmem:[%s761_s1 + $0x38] sm:$0xff]  ;;  %v73_v13 = vsel %vm62_vm0, %v45_v5, 0  ;;  %484 = vmatprep.mubr.msk.bf16.mxu0 %vm62_vm0, %v654_v9  ;;  %v156_v47 = vlaneseq  ;;  %vm401_vm13 = vcmask 0  }
   0x8   :  { %v47_v14 = vpack.c.bf16 %v34_v12, %v33_v11  ;;  %v35_v15 = vld [vmem:[%s761_s1 + $0x40] sm:$0xff]  ;;  %v36_v16 = vld [vmem:[%s761_s1 + $0x48] sm:$0xff]  ;;  %v37_v18 = vld [vmem:[%s761_s1 + $0x50] sm:$0xff] }
   0x9   :  { %533 = vmatpush3.bf16.msra.mxu1 %v45_v5  ;;  %v48_v17 = vpack.c.bf16 %v36_v16, %v35_v15  ;;  %v38_v19 = vld [vmem:[%s761_s1 + $0x58] sm:$0xff]  ;;  %v76_v20 = vsel %vm62_vm0, %v46_v10, 0  ;;  %v39_v22 = vld [vmem:[%s761_s1 + $0x60] sm:$0xff]  ;;  %v40_v23 = vld [vmem:[%s761_s1 + $0x68] sm:$0xff]  ;;  %v711_v48 = vand.u32 127, %v156_v47 }
   0xa   :  { %535 = vmatprep.subr.bf16.mxu1 %v46_v10  ;;  %v49_v21 = vpack.c.bf16 %v38_v19, %v37_v18  ;;  %v50_v24 = vpack.c.bf16 %v40_v23, %v39_v22  ;;  %v41_v25 = vld [vmem:[%s761_s1 + $0x70] sm:$0xff]  ;;  %v42_v26 = vld [vmem:[%s761_s1 + $0x78] sm:$0xff]  ;;  %v79_v27 = vsel %vm62_vm0, %v47_v14, 0  ;;  %v704_v33 = vld [vmem:[%s760_s0 + $0x8] sm:$0xff]  }
   0xb   :  { %v51_v28 = vpack.c.bf16 %v42_v26, %v41_v25  ;;  %v82_v29 = vsel %vm62_vm0, %v48_v17, 0  ;;  %v429_v35 = vld [vmem:[%s762_s2] ss:$0 sm:$0xff] }
   0xc   :  { %v85_v30 = vsel %vm62_vm0, %v49_v21, 0  ;;  %v88_v31 = vsel %vm62_vm0, %v50_v24, 0 }
   0xd   :  { %471 = vmatpush3.bf16.xpose.msra.mxu0 %v73_v13  ;;  %537 = vmatpush3.bf16.msra.mxu1 %v46_v10  ;;  %v91_v32 = vsel %vm62_vm0, %v51_v28, 0 }
   0xe   :  { %560 = vmatprep.subr.msk.bf16.mxu0 %vm62_vm0, %v46_v10  ;;  %539 = vmatprep.subr.bf16.mxu1 %v47_v14 }
  0x11   :  { %541 = vmatpush3.bf16.msra.mxu1 %v47_v14 }
  0x12   :  { %543 = vmatprep.subr.bf16.mxu1 %v48_v17 }
  0x15   :  { %473 = vmatpush3.bf16.xpose.msra.mxu0 %v76_v20  ;;  %545 = vmatpush3.bf16.msra.mxu1 %v48_v17 }
  0x16   :  { %561 = vmatprep.subr.msk.bf16.mxu0 %vm62_vm0, %v47_v14  ;;  %547 = vmatprep.subr.bf16.mxu1 %v49_v21 }
  0x19   :  { %549 = vmatpush3.bf16.msra.mxu1 %v49_v21 }
  0x1a   :  { %551 = vmatprep.subr.bf16.mxu1 %v50_v24 }
  0x1d   :  { %475 = vmatpush3.bf16.xpose.msra.mxu0 %v79_v27  ;;  %553 = vmatpush3.bf16.msra.mxu1 %v50_v24 }
  0x1e   :  { %562 = vmatprep.subr.msk.bf16.mxu0 %vm62_vm0, %v48_v17  ;;  %555 = vmatprep.subr.bf16.mxu1 %v51_v28 }
  0x21   :  { %557 = vmatpush3.bf16.msra.mxu1 %v51_v28 }
  0x25   :  { %477 = vmatpush3.bf16.xpose.msra.mxu0 %v82_v29 }
  0x26   :  { %563 = vmatprep.subr.msk.bf16.mxu0 %vm62_vm0, %v49_v21 }
  0x2d   :  { %479 = vmatpush3.bf16.xpose.msra.mxu0 %v85_v30 }
  0x2e   :  { %564 = vmatprep.subr.msk.bf16.mxu0 %vm62_vm0, %v50_v24 }
  0x35   :  { %481 = vmatpush3.bf16.xpose.msra.mxu0 %v88_v31 }
  0x36   :  { %565 = vmatprep.subr.msk.bf16.mxu0 %vm62_vm0, %v51_v28 }
  0x3d   :  { %483 = vmatpush3.bf16.xpose.msra.mxu0 %v91_v32  ;;  %v597_v32 = vmov 1.0  }
  0x44   :  { %485 = vmatmul.mubr.msk.bf16.vlgmr.msra.gmra.mrb[0].mxu0 %vm62_vm0, %v704_v33 }
 0x117   :  { %v486_v34 = vpop.f32.mrb[0].mxu0 }
 0x118   :  { %v144_v36 = vmul.f32 2.0, %v486_v34  ;;  %v127_v37 = vpop.f32.mrb[1].mxu0 }
 0x119   :  { %v142_v38 = vmul.f32 2.0, %v127_v37  ;;  %v487_v39 = vpop.f32.mrb[2].mxu0 }
 0x11a   :  { %v145_v40 = vmul.f32 2.0, %v487_v39  ;;  %v130_v41 = vpop.f32.mrb[3].mxu0  ;;  %v154_v42 = vsub.f32 %v429_v35, %v144_v36  ;;  %v598_v39 = vmov 0.0  }
 0x11b   :  { %v143_v43 = vmul.f32 2.0, %v130_v41  ;;  %v152_v44 = vsub.f32 %v429_v35, %v142_v38 }
 0x11c   :  { %162 = vmin.xlane.f32.xlu1 %v154_v42  ;;  %v155_v45 = vsub.f32 %v429_v35, %v145_v40 }
 0x11d   :  { %158 = vmin.xlane.f32.xlu0 %v152_v44  ;;  %v153_v46 = vsub.f32 %v429_v35, %v143_v43 }
 0x120   :  { %164 = vmin.xlane.f32.xlu1 %v155_v45 }
 0x121   :  { %160 = vmin.xlane.f32.xlu0 %v153_v46 }
 0x1a9   :  { %v163_v49 = vpop.xlane.xlu1 %162 }
 0x1aa   :  { %vm168_vm1 = vcmp.le.f32.partialorder %v154_v42, %v163_v49  ;;  %v159_v50 = vpop.xlane.xlu0 %158 }
 0x1ab   :  { %vm166_vm2 = vcmp.le.f32.partialorder %v152_v44, %v159_v50  ;;  %v172_v51 = vsel %vm168_vm1, %v711_v48, 128 }
 0x1ac   :  { %v170_v52 = vsel %vm166_vm2, %v711_v48, 128  ;;  %v203_v57 = vshra.s32 %v172_v51, 16  ;;  %v202_v2 = vand.u32 65535, %v172_v51 }
 0x1ad   :  { %v165_v53 = vpop.xlane.xlu1 %164  ;;  %v175_v54 = vshra.s32 %v170_v52, 16  ;;  %v174_v1 = vand.u32 65535, %v170_v52 }
 0x1ae   :  { %vm169_vm3 = vcmp.le.f32.partialorder %v155_v45, %v165_v53  ;;  %v161_v55 = vpop.xlane.xlu0 %160  ;;  %v205_v61 = vcvt.s32.f32 %v203_v57  ;;  %v204_v12 = vcvt.s32.f32 %v202_v2 }
 0x1af   :  { %vm167_vm4 = vcmp.le.f32.partialorder %v153_v46, %v161_v55  ;;  %v177_v56 = vcvt.s32.f32 %v175_v54  ;;  %v173_v58 = vsel %vm169_vm3, %v711_v48, 128  ;;  %v176_v5 = vcvt.s32.f32 %v174_v1 }
 0x1b0   :  { %v171_v59 = vsel %vm167_vm4, %v711_v48, 128  ;;  %v217_v63 = vshra.s32 %v173_v58, 16  ;;  %v216_v7 = vand.u32 65535, %v173_v58  ;;  %v24_v55 = vunpack.c.h.bf16 %v654_v9 }
 0x1b1   :  { %178 = vmin.xlane.f32.xlu0 %v177_v56  ;;  %v189_v60 = vshra.s32 %v171_v59, 16  ;;  %v188_v3 = vand.u32 65535, %v171_v59  ;;  %v26_v59 = vunpack.c.h.bf16 %v704_v33 }
 0x1b2   :  { %v219_v0 = vcvt.s32.f32 %v217_v63  ;;  %v218_v16 = vcvt.s32.f32 %v216_v7 }
 0x1b3   :  { %v191_v62 = vcvt.s32.f32 %v189_v60  ;;  %v190_v11 = vcvt.s32.f32 %v188_v3 }
 0x1b5   :  { %206 = vmin.xlane.f32.xlu0 %v205_v61  ;;  %192 = vmin.xlane.f32.xlu1 %v191_v62 }
 0x1b9   :  { %220 = vmin.xlane.f32.xlu1 %v219_v0 }
 0x23e   :  { %v179_v4 = vpop.xlane.xlu0 %178 }
 0x23f   :  { %vm180_vm5 = vcmp.eq.f32.partialorder %v177_v56, %v179_v4  ;;  %v185_v18 = vcvt.f32.s32 %v179_v4  ;;  %v23_v56 = vunpack.c.l.bf16 %v654_v9 }
 0x240   :  { %v181_v6 = vsel %vm180_vm5, %v176_v5, inf }
 0x241   :  { %182 = vmin.xlane.f32.xlu0 %v181_v6  ;;  %v186_v22 = vshll.u32 %v185_v18, 16 }
 0x242   :  { %v193_v8 = vpop.xlane.xlu1 %192  ;;  %v207_v10 = vpop.xlane.xlu0 %206 }
 0x243   :  { %vm194_vm6 = vcmp.eq.f32.partialorder %v191_v62, %v193_v8  ;;  %vm208_vm7 = vcmp.eq.f32.partialorder %v205_v61, %v207_v10  ;;  %v199_v19 = vcvt.f32.s32 %v193_v8  ;;  %v213_v20 = vcvt.f32.s32 %v207_v10 }
 0x244   :  { %v195_v13 = vsel %vm194_vm6, %v190_v11, inf  ;;  %v209_v14 = vsel %vm208_vm7, %v204_v12, inf  ;;  %v25_v61 = vunpack.c.l.bf16 %v704_v33 }
 0x245   :  { %196 = vmin.xlane.f32.xlu1 %v195_v13  ;;  %210 = vmin.xlane.f32.xlu0 %v209_v14  ;;  %v200_v25 = vshll.u32 %v199_v19, 16  ;;  %v214_v26 = vshll.u32 %v213_v20, 16 }
 0x246   :  { %v221_v15 = vpop.xlane.xlu1 %220 }
 0x247   :  { %vm222_vm8 = vcmp.eq.f32.partialorder %v219_v0, %v221_v15  ;;  %v227_v29 = vcvt.f32.s32 %v221_v15 }
 0x248   :  { %v223_v17 = vsel %vm222_vm8, %v218_v16, inf }
 0x249   :  { %224 = vmin.xlane.f32.xlu1 %v223_v17  ;;  %v228_v37 = vshll.u32 %v227_v29, 16 }
 0x2ce   :  { %v183_v21 = vpop.xlane.xlu0 %182 }
 0x2cf   :  { %v184_v23 = vcvt.f32.s32 %v183_v21 }
 0x2d1   :  { %v187_v24 = vadd.s32 %v186_v22, %v184_v23 }
 0x2d2   :  { %v197_v27 = vpop.xlane.xlu1 %196  ;;  %v211_v28 = vpop.xlane.xlu0 %210 }
 0x2d3   :  { %v198_v30 = vcvt.f32.s32 %v197_v27  ;;  %v212_v31 = vcvt.f32.s32 %v211_v28  ;;  %vm230_vm9 = vcmp.eq.s32.totalorder %v711_v48, %v187_v24 }
 0x2d4   :  { %520 = vmatprep.mubr.msk.f32.mxu1 %vm230_vm9, %v597_v32  ;;  %v430_v40 = vsel %vm230_vm9, 1.0, %v598_v39 }
 0x2d5   :  { %v201_v34 = vadd.s32 %v200_v25, %v198_v30  ;;  %v215_v35 = vadd.s32 %v214_v26, %v212_v31 }
 0x2d6   :  { %v225_v36 = vpop.xlane.xlu1 %224 }
 0x2d7   :  { %vm231_vm10 = vcmp.eq.s32.totalorder %v711_v48, %v201_v34  ;;  %v226_v38 = vcvt.f32.s32 %v225_v36  ;;  %vm232_vm11 = vcmp.eq.s32.totalorder %v711_v48, %v215_v35 }
 0x2d8   :  { %v431_v41 = vsel %vm231_vm10, 1.0, %v598_v39  ;;  %521 = vmatmul.mubr.msk.f32.vlgmr.msra.gmra.mrb[0].mxu1 %vm231_vm10, %v597_v32  ;;  %v432_v44 = vsel %vm232_vm11, 1.0, %v598_v39 }
 0x2d9   :  { %v358_v42 = vadd.f32 %v431_v41, %v430_v40  ;;  %v229_v43 = vadd.s32 %v228_v37, %v226_v38  ;;  %523 = vmatprep.mubr.msk.f32.mxu1 %vm232_vm11, %v597_v32 }
 0x2db   :  { %v359_v45 = vadd.f32 %v432_v44, %v358_v42  ;;  %vm233_vm12 = vcmp.eq.s32.totalorder %v711_v48, %v229_v43 }
 0x2dc   :  { %v433_v46 = vsel %vm233_vm12, 1.0, %v598_v39  ;;  %524 = vmatmul.mubr.msk.f32.gmra.mrb[2].mxu1 %vm233_vm12, %v597_v32 }
 0x2dd   :  { %v360_v47 = vadd.f32 %v433_v46, %v359_v45 }
 0x2df   :  { %v361_v49 = vrot.slane %v360_v47, 4 }
 0x2e1   :  { %v362_v50 = vadd.f32 %v361_v49, %v360_v47 }
 0x2e3   :  { %v363_v51 = vrot.slane %v362_v50, 2 }
 0x2e5   :  { %v364_v52 = vadd.f32 %v363_v51, %v362_v50 }
 0x2e7   :  { %v365_v53 = vrot.slane %v364_v52, 1 }
 0x2e9   :  { %v366_v54 = vadd.f32 %v365_v53, %v364_v52 }
 0x2eb   :  { %367 = vst [vmem:[%s764_s4] sm:$0xff] %v366_v54 }
 0x3ab   :  { %v522_v57 = vpop.f32.mrb[0].mxu1 }
 0x3ac   :  { %328 = vst.msk [vmem:[%s763_s3 + $0x8] sm:$0xff] %vm62_vm0, %v522_v57  ;;  %v369_v48 = vsub.f32 %v522_v57, %v24_v55  ;;  %v308_v58 = vpop.f32.mrb[1].mxu1 }
 0x3ad   :  { %327 = vst.msk [vmem:[%s763_s3] sm:$0xff] %vm62_vm0, %v308_v58  ;;  %v368_v60 = vsub.f32 %v308_v58, %v23_v56 }
 0x3ae   :  { %v377_v62 = vmul.f32 %v369_v48, %v369_v48 }
 0x3af   :  { %v376_v9 = vmul.f32 %v368_v60, %v368_v60  ;;  %v525_v63 = vpop.f32.mrb[2].mxu1 }
 0x3b0   :  { %330 = vst.msk [vmem:[%s763_s3 + $0x18] sm:$0xff] %vm62_vm0, %v525_v63  ;;  %v371_v0 = vsub.f32 %v525_v63, %v26_v59  ;;  %v318_v1 = vpop.f32.mrb[3].mxu1  ;;  %v383_v2 = vsel %vm62_vm0, %v377_v62, 0.0 }
 0x3b1   :  { %329 = vst.msk [vmem:[%s763_s3 + $0x10] sm:$0xff] %vm62_vm0, %v318_v1  ;;  %v370_v3 = vsub.f32 %v318_v1, %v25_v61  ;;  %384 = vadd.xlane.f32.xlu1 %v383_v2  ;;  %v380_v33 = vsel %vm62_vm0, %v376_v9, 0.0  ;;  %s599_s3 = smov [#allocation2]  }
 0x3b2   :  { %v379_v4 = vmul.f32 %v371_v0, %v371_v0  ;;  %381 = vadd.xlane.f32.xlu0 %v380_v33  ;;  %s413_s12 = sshll.u32 %s599_s3, 4  ;;  %s414_s12 = int_to_ptr.vmem [resolvable:$true] %s413_s12 }
 0x3b3   :  { %v378_v5 = vmul.f32 %v370_v3, %v370_v3  ;;  %s573_s13 = scalar_lea.vmem %s414_s12, 16  ;;  %s577_s14 = scalar_lea.vmem %s414_s12, 32 }
 0x3b4   :  { %v389_v6 = vsel %vm62_vm0, %v379_v4, 0.0  ;;  %p574_p0 = scmp.ne.s32.totalorder %s414_s12, %s573_s13  ;;  %p578_p1 = scmp.lt.s32.totalorder %s414_s12, %s414_s12 }
 0x3b5   :  { %390 = vadd.xlane.f32.xlu1 %v389_v6  ;;  %v386_v7 = vsel %vm62_vm0, %v378_v5, 0.0  ;;  %p579_p2 = scmp.lt.s32.totalorder %s577_s14, %s573_s13 }
 0x3b6   :  { %387 = vadd.xlane.f32.xlu0 %v386_v7 }
 0x3b7   :  { %p580_p3 = por %p579_p2, %p578_p1 }
 0x3b9   :  { %p581_p4 = pnand %p580_p3, %p574_p0 }
 0x43e   :  { %v385_v8 = vpop.xlane.xlu1 %384 }
 0x43f   :  { %v382_v10 = vpop.xlane.xlu0 %381 }
 0x440   :  { %v392_v11 = vadd.f32 %v385_v8, %v382_v10 }
 0x442   :  { %v391_v14 = vpop.xlane.xlu1 %390 }
 0x443   :  { %v388_v12 = vpop.xlane.xlu0 %387 }
 0x444   :  { %v393_v13 = vadd.f32 %v392_v11, %v388_v12 }
 0x446   :  { %v394_v15 = vadd.f32 %v393_v13, %v391_v14 }
 0x448   :  { %v395_v16 = vrot.slane %v394_v15, 4 }
 0x44a   :  { %v396_v17 = vadd.f32 %v395_v16, %v394_v15 }
 0x44c   :  { %v397_v18 = vrot.slane %v396_v17, 2 }
 0x44e   :  { %v398_v19 = vadd.f32 %v397_v18, %v396_v17 }
 0x450   :  { %v399_v20 = vrot.slane %v398_v19, 1 }
 0x452   :  { %v400_v21 = vadd.f32 %v399_v20, %v398_v19 }
 0x454   :  { %402 = vst.msk [vmem:[#allocation2] sm:$0x1] %vm401_vm13, %v400_v21 }
 0x455   :  { %584 = shalt.err (!%p581_p4)
}
 0x456   :  { %s585_s17 = scalar_lea.hbm %s765_s5, 16 }
 0x457   :  { %p586_p5 = scmp.ne.s32.totalorder %s765_s5, %s585_s17  ;;  %p589_p6 = scmp.lt.u32.totalorder %s585_s17, %s765_s5 }
 0x459   :  { %p591_p7 = pnand %p589_p6, %p586_p5 }
 0x45b   :  { %594 = shalt.err (!%p591_p7)
}
 0x45c   :  { %416 = dma.vmem_to_hbm [thread:$0]  %s414_s12, 16, %s765_s5, [#allocation3]  }
 0x45d   :  { %595 = dma.done.wait [#allocation3], 16  }
 0x45e   :  { %596 = vsyncadd [#allocation3], 4294967280 }
 0x45f   :  { %424 = vsyncpa [#allocation3], 1 }

// kernel: vqvae_forward.23
= control target key start
LH: loop header
LB: loop body
LE: loop exit
PB: predicated region body
PF: predicated region fallthrough
CT: control target
= control target key end

     0   :  { %v631_v34 = vmov 0.0   ;;  %vm632_vm0 = vmmov 0   ;;  %vm331_vm1 = vcmask 523264   ;;  %s774_s1 = inlined_call_operand.vmem [shape: bf16[576,128], index: 1, kind: input, shape index: {}]   ;;  %s775_s0 = inlined_call_operand.vmem [shape: bf16[16,576], index: 0, kind: input, shape index: {}]   ;;  %s776_s2 = inlined_call_operand.vmem [shape: bf16[16,128], index: 2, kind: output, shape index: {}]  }
   0x1   :  { %v588_v0 = vld [vmem:[%s774_s1 + $0x40] sm:$0xff]   ;;  %v592_v4 = vld [vmem:[%s774_s1 + $0x48] sm:$0xff]   ;;  %v596_v8 = vld [vmem:[%s774_s1 + $0x50] sm:$0xff]  }
   0x2   :  { %v589_v1 = vld [vmem:[%s774_s1 + $0xc0] sm:$0xff]   ;;  %525 = vmatprep.subr.bf16.mxu0 %v588_v0  ;;  %v593_v5 = vld [vmem:[%s774_s1 + $0xc8] sm:$0xff]   ;;  %v597_v9 = vld [vmem:[%s774_s1 + $0xd0] sm:$0xff]  }
   0x3   :  { %v590_v2 = vld [vmem:[%s774_s1] sm:$0xff]   ;;  %547 = vmatprep.subr.bf16.mxu1 %v589_v1  ;;  %v594_v6 = vld [vmem:[%s774_s1 + $0x8] sm:$0xff]   ;;  %v598_v10 = vld [vmem:[%s774_s1 + $0x10] sm:$0xff]  }
   0x4   :  { %v591_v3 = vld [vmem:[%s774_s1 + $0x80] sm:$0xff]   ;;  %526 = vmatpush3.bf16.msra.mxu0 %v590_v2  ;;  %v595_v7 = vld [vmem:[%s774_s1 + $0x88] sm:$0xff]   ;;  %v599_v11 = vld [vmem:[%s774_s1 + $0x90] sm:$0xff]  }
   0x5   :  { %548 = vmatpush3.bf16.msra.mxu1 %v591_v3  ;;  %527 = vmatprep.subr.bf16.mxu0 %v592_v4  ;;  %v600_v12 = vld [vmem:[%s774_s1 + $0x58] sm:$0xff]   ;;  %v604_v16 = vld [vmem:[%s774_s1 + $0x60] sm:$0xff]   ;;  %v608_v20 = vld [vmem:[%s774_s1 + $0x68] sm:$0xff]  }
   0x6   :  { %549 = vmatprep.subr.bf16.mxu1 %v593_v5  ;;  %v601_v13 = vld [vmem:[%s774_s1 + $0xd8] sm:$0xff]   ;;  %v605_v17 = vld [vmem:[%s774_s1 + $0xe0] sm:$0xff]   ;;  %v609_v21 = vld [vmem:[%s774_s1 + $0xe8] sm:$0xff]  }
   0x7   :  { %v602_v14 = vld [vmem:[%s774_s1 + $0x18] sm:$0xff]   ;;  %v606_v18 = vld [vmem:[%s774_s1 + $0x20] sm:$0xff]   ;;  %v610_v22 = vld [vmem:[%s774_s1 + $0x28] sm:$0xff]  }
   0x8   :  { %528 = vmatpush3.bf16.msra.mxu0 %v594_v6  ;;  %v603_v15 = vld [vmem:[%s774_s1 + $0x98] sm:$0xff]   ;;  %v607_v19 = vld [vmem:[%s774_s1 + $0xa0] sm:$0xff]   ;;  %v611_v23 = vld [vmem:[%s774_s1 + $0xa8] sm:$0xff]  }
   0x9   :  { %550 = vmatpush3.bf16.msra.mxu1 %v595_v7  ;;  %529 = vmatprep.subr.bf16.mxu0 %v596_v8  ;;  %v612_v24 = vld [vmem:[%s774_s1 + $0x70] sm:$0xff]   ;;  %v616_v28 = vld [vmem:[%s774_s1 + $0x78] sm:$0xff]   ;;  %v625_v36 = vld [vmem:[%s775_s0 + $0xc] ss:$20 sps:$4 sm:$0xff]  }
   0xa   :  { %551 = vmatprep.subr.bf16.mxu1 %v597_v9  ;;  %v613_v25 = vld [vmem:[%s774_s1 + $0xf0] sm:$0xff]   ;;  %v617_v29 = vld [vmem:[%s774_s1 + $0xf8] sm:$0xff]   ;;  %v626_v37 = vld [vmem:[%s774_s1 + $0x100] sm:$0xff]   ;;  %408 = vmatprep.mubr.bf16.mxu1 %v625_v36 }
   0xb   :  { %v614_v26 = vld [vmem:[%s774_s1 + $0x30] sm:$0xff]   ;;  %v618_v30 = vld [vmem:[%s774_s1 + $0x38] sm:$0xff]   ;;  %v627_v38 = vld [vmem:[%s774_s1 + $0x108] sm:$0xff]  }
   0xc   :  { %530 = vmatpush3.bf16.msra.mxu0 %v598_v10  ;;  %v615_v27 = vld [vmem:[%s774_s1 + $0xb0] sm:$0xff]   ;;  %v619_v31 = vld [vmem:[%s774_s1 + $0xb8] sm:$0xff]  }
   0xd   :  { %552 = vmatpush3.bf16.msra.mxu1 %v599_v11  ;;  %531 = vmatprep.subr.bf16.mxu0 %v600_v12  ;;  %v620_v32 = vld [vmem:[%s775_s0] ss:$20 sps:$4 sm:$0xff]   ;;  %v622_v33 = vld [vmem:[%s775_s0 + $0x4] ss:$20 sps:$4 sm:$0xff]   ;;  %v623_v35 = vld [vmem:[%s775_s0 + $0x8] ss:$20 sps:$4 sm:$0xff]  }
   0xe   :  { %553 = vmatprep.subr.bf16.mxu1 %v601_v13  ;;  %367 = vmatprep.mubr.bf16.mxu0 %v622_v33  ;;  %v628_v39 = vld [vmem:[%s774_s1 + $0x110] sm:$0xff]   ;;  %v629_v40 = vld [vmem:[%s774_s1 + $0x118] sm:$0xff]  }
   0xf   :  { %v630_v41 = vld [vmem:[%s775_s0 + $0x10] ss:$20 sps:$4 sm:$0xff]  }
  0x10   :  { %532 = vmatpush3.bf16.msra.mxu0 %v602_v14 }
  0x11   :  { %554 = vmatpush3.bf16.msra.mxu1 %v603_v15  ;;  %533 = vmatprep.subr.bf16.mxu0 %v604_v16 }
  0x12   :  { %555 = vmatprep.subr.bf16.mxu1 %v605_v17 }
  0x14   :  { %534 = vmatpush3.bf16.msra.mxu0 %v606_v18 }
  0x15   :  { %556 = vmatpush3.bf16.msra.mxu1 %v607_v19  ;;  %535 = vmatprep.subr.bf16.mxu0 %v608_v20 }
  0x16   :  { %557 = vmatprep.subr.bf16.mxu1 %v609_v21 }
  0x18   :  { %536 = vmatpush3.bf16.msra.mxu0 %v610_v22 }
  0x19   :  { %558 = vmatpush3.bf16.msra.mxu1 %v611_v23  ;;  %537 = vmatprep.subr.bf16.mxu0 %v612_v24 }
  0x1a   :  { %559 = vmatprep.subr.bf16.mxu1 %v613_v25 }
  0x1c   :  { %538 = vmatpush3.bf16.msra.mxu0 %v614_v26 }
  0x1d   :  { %560 = vmatpush3.bf16.msra.mxu1 %v615_v27  ;;  %539 = vmatprep.subr.bf16.mxu0 %v616_v28 }
  0x1e   :  { %561 = vmatprep.subr.bf16.mxu1 %v617_v29 }
  0x20   :  { %540 = vmatpush3.bf16.msra.mxu0 %v618_v30 }
  0x21   :  { %562 = vmatpush3.bf16.msra.mxu1 %v619_v31  ;;  %574 = vmatprep.subr.bf16.mxu0 %v631_v34 }
  0x23   :  { %368 = vmatmul.mubr.bf16.vlgmr.msra.gmra.mrb[0].mxu0 %v620_v32 }
  0x24   :  { %409 = vmatmul.mubr.bf16.vlgmr.msra.gmra.mrb[0].mxu1 %v623_v35  ;;  %575 = vmatpush3.bf16.msra.mxu0 %v626_v37 }
  0x25   :  { %576 = vmatprep.subr.bf16.mxu0 %v631_v34  ;;  %582 = vmatprep.mubr.msk.bf16.mxu0 %vm632_vm0, %v631_v34 }
  0x28   :  { %577 = vmatpush3.bf16.msra.mxu0 %v627_v38 }
  0x29   :  { %578 = vmatprep.subr.bf16.mxu0 %v631_v34 }
  0x2c   :  { %579 = vmatpush3.bf16.msra.mxu0 %v628_v39 }
  0x2d   :  { %580 = vmatprep.subr.bf16.mxu0 %v631_v34 }
  0x30   :  { %581 = vmatpush3.bf16.msra.mxu0 %v629_v40 }
  0x33   :  { %583 = vmatmul.mubr.msk.bf16.vlgmr.msra.gmra.mrb[4].mxu0 %vm331_vm1, %v630_v41 }
  0xf6   :  { %v541_v42 = vpop.f32.mrb[0].mxu0 }
  0xf7   :  { %v563_v43 = vpop.f32.mrb[0].mxu1  ;;  %v542_v44 = vpop.f32.mrb[1].mxu0 }
  0xf8   :  { %v543_v45 = vadd.f32 %v542_v44, %v541_v42  ;;  %v564_v46 = vpop.f32.mrb[1].mxu1  ;;  %v544_v47 = vpop.f32.mrb[2].mxu0 }
  0xf9   :  { %v565_v48 = vadd.f32 %v564_v46, %v563_v43  ;;  %v566_v49 = vpop.f32.mrb[2].mxu1  ;;  %v545_v50 = vpop.f32.mrb[3].mxu0 }
  0xfa   :  { %v546_v51 = vadd.f32 %v545_v50, %v544_v47  ;;  %v567_v52 = vpop.f32.mrb[3].mxu1 }
  0xfb   :  { %v568_v53 = vadd.f32 %v567_v52, %v566_v49  ;;  %v411_v54 = vadd.f32 %v565_v48, %v543_v45 }
  0xfd   :  { %v414_v55 = vadd.f32 %v568_v53, %v546_v51 }
 0x106   :  { %v451_v56 = vpop.f32.mrb[4].mxu0 }
 0x107   :  { %v452_v57 = vadd.f32 %v451_v56, %v411_v54  ;;  %v584_v58 = vpop.f32.mrb[5].mxu0 }
 0x108   :  { %v454_v59 = vpop.f32.mrb[6].mxu0 }
 0x109   :  { %v455_v60 = vadd.f32 %v454_v59, %v414_v55  ;;  %v585_v61 = vpop.f32.mrb[7].mxu0  ;;  %v458_v62 = vmax.f32 %v452_v57, 0.0 }
 0x10b   :  { %v459_v63 = vmax.f32 %v455_v60, 0.0 }
 0x10d   :  { %v523_v0 = vpack.c.bf16 %v459_v63, %v458_v62 }
 0x10f   :  { %524 = vst [vmem:[%s776_s2] sm:$0xff] %v523_v0  }

// kernel: vqvae_forward.25
= control target key start
LH: loop header
LB: loop body
LE: loop exit
PB: predicated region body
PF: predicated region fallthrough
CT: control target
= control target key end

     0   :  { %v608_v0 = vmov 0   ;;  %vm172_vm0 = vcmask 130048   ;;  %vm438_vm2 = vcmask 97280   ;;  %s867_s1 = inlined_call_operand.vmem [shape: bf16[144,12], index: 1, kind: input, shape index: {}]   ;;  %s868_s0 = inlined_call_operand.vmem [shape: bf16[128,144], index: 0, kind: input, shape index: {}]   ;;  %s869_s2 = inlined_call_operand.vmem [shape: f32[128,12], index: 2, kind: output, shape index: {}]  }
   0x1   :  { %197 = vmatprep.subr.bf16.mxu0 %v608_v0  ;;  %492 = vmatprep.subr.bf16.mxu1 %v608_v0  ;;  %v511_v1 = vld [vmem:[%s867_s1] sm:$0xff]   ;;  %v512_v2 = vld [vmem:[%s867_s1 + $0x8] sm:$0xff]   ;;  %v513_v3 = vld [vmem:[%s867_s1 + $0x10] sm:$0xff]  }
   0x2   :  { %198 = vmatpush1.bf16.msra.mxu0 %v511_v1  ;;  %501 = vmatpush1.bf16.msra.mxu1 %v511_v1  ;;  %v514_v4 = vld [vmem:[%s867_s1 + $0x18] sm:$0xff]   ;;  %v522_v5 = vld [vmem:[%s868_s0 + $0x4] ss:$8 sps:$4 sm:$0xff]   ;;  %v517_v9 = vld [vmem:[%s867_s1 + $0x30] sm:$0xff]  }
   0x3   :  { %199 = vmatprep.subr.bf16.mxu0 %v608_v0  ;;  %493 = vmatprep.subr.bf16.mxu1 %v608_v0  ;;  %v525_v6 = vld [vmem:[%s868_s0 + $0x44] ss:$8 sps:$4 sm:$0xff]   ;;  %v518_v10 = vld [vmem:[%s867_s1 + $0x38] sm:$0xff]   ;;  %v520_v12 = vld [vmem:[%s868_s0] ss:$8 sps:$4 sm:$0xff]  }
   0x4   :  { %484 = vmatprep.mubr.msk.bf16.mxu0 %vm172_vm0, %v522_v5  ;;  %488 = vmatprep.mubr.msk.bf16.mxu1 %vm172_vm0, %v525_v6  ;;  %v515_v7 = vld [vmem:[%s867_s1 + $0x20] sm:$0xff]   ;;  %v516_v8 = vld [vmem:[%s867_s1 + $0x28] sm:$0xff]   ;;  %v526_v14 = vld [vmem:[%s868_s0 + $0x14] ss:$8 sps:$4 sm:$0xff]  }
   0x5   :  { %v519_v11 = vld [vmem:[%s867_s1 + $0x40] sm:$0xff]   ;;  %v528_v15 = vld [vmem:[%s868_s0 + $0x54] ss:$8 sps:$4 sm:$0xff]   ;;  %v530_v16 = vld [vmem:[%s868_s0 + $0x10] ss:$8 sps:$4 sm:$0xff]  }
   0x6   :  { %200 = vmatpush1.bf16.msra.mxu0 %v512_v2  ;;  %502 = vmatpush1.bf16.msra.mxu1 %v512_v2  ;;  %v523_v13 = vld [vmem:[%s868_s0 + $0x40] ss:$8 sps:$4 sm:$0xff]   ;;  %v531_v17 = vld [vmem:[%s868_s0 + $0x50] ss:$8 sps:$4 sm:$0xff]   ;;  %v532_v18 = vld [vmem:[%s868_s0 + $0x24] ss:$8 sps:$4 sm:$0xff]  }
   0x7   :  { %201 = vmatprep.subr.bf16.mxu0 %v608_v0  ;;  %494 = vmatprep.subr.bf16.mxu1 %v608_v0  ;;  %v534_v19 = vld [vmem:[%s868_s0 + $0x64] ss:$8 sps:$4 sm:$0xff]   ;;  %v536_v20 = vld [vmem:[%s868_s0 + $0x20] ss:$8 sps:$4 sm:$0xff]   ;;  %v538_v22 = vld [vmem:[%s868_s0 + $0x34] ss:$8 sps:$4 sm:$0xff]  }
   0x8   :  { %v537_v21 = vld [vmem:[%s868_s0 + $0x60] ss:$8 sps:$4 sm:$0xff]   ;;  %v540_v23 = vld [vmem:[%s868_s0 + $0x74] ss:$8 sps:$4 sm:$0xff]   ;;  %v542_v24 = vld [vmem:[%s868_s0 + $0x30] ss:$8 sps:$4 sm:$0xff]  }
   0x9   :  { %v543_v25 = vld [vmem:[%s868_s0 + $0x70] ss:$8 sps:$4 sm:$0xff]  }
   0xa   :  { %202 = vmatpush1.bf16.msra.mxu0 %v513_v3  ;;  %503 = vmatpush1.bf16.msra.mxu1 %v513_v3 }
   0xb   :  { %203 = vmatprep.subr.bf16.mxu0 %v608_v0  ;;  %495 = vmatprep.subr.bf16.mxu1 %v608_v0 }
   0xe   :  { %204 = vmatpush1.bf16.msra.mxu0 %v514_v4  ;;  %504 = vmatpush1.bf16.msra.mxu1 %v514_v4 }
   0xf   :  { %205 = vmatprep.subr.bf16.mxu0 %v608_v0  ;;  %496 = vmatprep.subr.bf16.mxu1 %v608_v0 }
  0x12   :  { %206 = vmatpush1.bf16.msra.mxu0 %v515_v7  ;;  %505 = vmatpush1.bf16.msra.mxu1 %v515_v7 }
  0x13   :  { %207 = vmatprep.subr.bf16.mxu0 %v608_v0  ;;  %497 = vmatprep.subr.bf16.mxu1 %v608_v0 }
  0x16   :  { %208 = vmatpush1.bf16.msra.mxu0 %v516_v8  ;;  %506 = vmatpush1.bf16.msra.mxu1 %v516_v8 }
  0x17   :  { %209 = vmatprep.subr.bf16.mxu0 %v608_v0  ;;  %498 = vmatprep.subr.bf16.mxu1 %v608_v0 }
  0x1a   :  { %210 = vmatpush1.bf16.msra.mxu0 %v517_v9  ;;  %507 = vmatpush1.bf16.msra.mxu1 %v517_v9 }
  0x1b   :  { %211 = vmatprep.subr.bf16.mxu0 %v608_v0  ;;  %499 = vmatprep.subr.bf16.mxu1 %v608_v0 }
  0x1e   :  { %212 = vmatpush1.bf16.msra.mxu0 %v518_v10  ;;  %508 = vmatpush1.bf16.msra.mxu1 %v518_v10 }
  0x1f   :  { %213 = vmatprep.subr.bf16.mxu0 %v608_v0  ;;  %500 = vmatprep.subr.bf16.mxu1 %v608_v0 }
  0x22   :  { %214 = vmatpush1.bf16.msra.mxu0 %v519_v11  ;;  %509 = vmatpush1.bf16.msra.mxu1 %v519_v11 }
  0x25   :  { %230 = vmatmul.mubr.bf16.vlgmr.msra.gmra.mrb[0].mxu0 %v520_v12  ;;  %262 = vmatmul.mubr.bf16.vlgmr.msra.gmra.mrb[0].mxu1 %v523_v13 }
  0x26   :  { %485 = vmatprep.mubr.msk.bf16.mxu0 %vm172_vm0, %v526_v14  ;;  %489 = vmatprep.mubr.msk.bf16.mxu1 %vm172_vm0, %v528_v15 }
  0x2d   :  { %238 = vmatmul.mubr.bf16.gmra.mrb[4].mxu0 %v530_v16  ;;  %270 = vmatmul.mubr.bf16.gmra.mrb[4].mxu1 %v531_v17 }
  0x2e   :  { %486 = vmatprep.mubr.msk.bf16.mxu0 %vm172_vm0, %v532_v18  ;;  %490 = vmatprep.mubr.msk.bf16.mxu1 %vm172_vm0, %v534_v19 }
  0x35   :  { %246 = vmatmul.mubr.bf16.gmra.mrb[8].mxu0 %v536_v20  ;;  %278 = vmatmul.mubr.bf16.gmra.mrb[8].mxu1 %v537_v21 }
  0x36   :  { %487 = vmatprep.mubr.msk.bf16.mxu0 %vm172_vm0, %v538_v22  ;;  %491 = vmatprep.mubr.msk.bf16.mxu1 %vm172_vm0, %v540_v23 }
  0x3d   :  { %254 = vmatmul.mubr.bf16.gmra.mrb[12].mxu0 %v542_v24  ;;  %286 = vmatmul.mubr.bf16.gmra.mrb[12].mxu1 %v543_v25 }
  0xf8   :  { %v707_v26 = vpop.f32.mrb[0].mxu0  ;;  %v709_v27 = vpop.f32.mrb[0].mxu1 }
  0xf9   :  { %v294_v28 = vand.u32 2147483647, %v707_v26  ;;  %v302_v29 = vand.u32 2147483647, %v709_v27  ;;  %v233_v30 = vpop.f32.mrb[1].mxu0  ;;  %v265_v31 = vpop.f32.mrb[1].mxu1 }
  0xfa   :  { %v713_v34 = vpop.f32.mrb[2].mxu0  ;;  %v715_v35 = vpop.f32.mrb[2].mxu1  ;;  %vm390_vm1 = vcmp.ge.f32.partialorder %v707_v26, 0.0  ;;  %vm398_vm3 = vcmp.ge.f32.partialorder %v709_v27, 0.0 }
  0xfb   :  { %v310_v32 = vsub.f32 0.0, %v294_v28  ;;  %v318_v33 = vsub.f32 0.0, %v302_v29  ;;  %v295_v36 = vand.u32 2147483647, %v713_v34  ;;  %v303_v37 = vand.u32 2147483647, %v715_v35 }
  0xfc   :  { %v236_v40 = vpop.f32.mrb[3].mxu0  ;;  %v268_v41 = vpop.f32.mrb[3].mxu1  ;;  %vm391_vm4 = vcmp.ge.f32.partialorder %v713_v34, 0.0  ;;  %vm399_vm5 = vcmp.ge.f32.partialorder %v715_v35, 0.0 }
  0xfd   :  { %v326_v38 = vmul.f32 1.442695, %v310_v32  ;;  %v342_v39 = vmul.f32 1.442695, %v318_v33  ;;  %v311_v42 = vsub.f32 0.0, %v295_v36  ;;  %v319_v43 = vsub.f32 0.0, %v303_v37 }
  0xff   :  { %544 = vpow2.f32 %v326_v38  ;;  %v328_v44 = vmul.f32 1.442695, %v311_v42  ;;  %v344_v45 = vmul.f32 1.442695, %v319_v43 }
 0x100   :  { %546 = vpow2.f32 %v342_v39  ;;  %v719_v46 = vpop.f32.mrb[4].mxu0  ;;  %v721_v47 = vpop.f32.mrb[4].mxu1 }
 0x101   :  { %v296_v48 = vand.u32 2147483647, %v719_v46  ;;  %v304_v49 = vand.u32 2147483647, %v721_v47  ;;  %548 = vpow2.f32 %v328_v44  ;;  %v241_v50 = vpop.f32.mrb[5].mxu0  ;;  %v273_v51 = vpop.f32.mrb[5].mxu1 }
 0x102   :  { %550 = vpow2.f32 %v344_v45  ;;  %v725_v54 = vpop.f32.mrb[6].mxu0  ;;  %v727_v55 = vpop.f32.mrb[6].mxu1  ;;  %vm392_vm6 = vcmp.ge.f32.partialorder %v719_v46, 0.0  ;;  %vm400_vm7 = vcmp.ge.f32.partialorder %v721_v47, 0.0 }
 0x103   :  { %v312_v52 = vsub.f32 0.0, %v296_v48  ;;  %v320_v53 = vsub.f32 0.0, %v304_v49  ;;  %v297_v56 = vand.u32 2147483647, %v725_v54  ;;  %v305_v57 = vand.u32 2147483647, %v727_v55 }
 0x104   :  { %v244_v60 = vpop.f32.mrb[7].mxu0  ;;  %v276_v61 = vpop.f32.mrb[7].mxu1  ;;  %vm393_vm8 = vcmp.ge.f32.partialorder %v725_v54, 0.0  ;;  %vm401_vm9 = vcmp.ge.f32.partialorder %v727_v55, 0.0 }
 0x105   :  { %v330_v58 = vmul.f32 1.442695, %v312_v52  ;;  %v346_v59 = vmul.f32 1.442695, %v320_v53  ;;  %v313_v62 = vsub.f32 0.0, %v297_v56  ;;  %v321_v63 = vsub.f32 0.0, %v305_v57 }
 0x107   :  { %552 = vpow2.f32 %v330_v58  ;;  %v332_v0 = vmul.f32 1.442695, %v313_v62  ;;  %v348_v1 = vmul.f32 1.442695, %v321_v63 }
 0x108   :  { %554 = vpow2.f32 %v346_v59  ;;  %v731_v2 = vpop.f32.mrb[8].mxu0  ;;  %v733_v3 = vpop.f32.mrb[8].mxu1 }
 0x109   :  { %v735_v4 = vpop.eup %544  ;;  %v298_v5 = vand.u32 2147483647, %v731_v2  ;;  %v306_v6 = vand.u32 2147483647, %v733_v3  ;;  %556 = vpow2.f32 %v332_v0  ;;  %v249_v9 = vpop.f32.mrb[9].mxu0  ;;  %vm394_vm10 = vcmp.ge.f32.partialorder %v731_v2, 0.0 }
 0x10a   :  { %v739_v7 = vpop.eup %546  ;;  %v358_v8 = vadd.f32 1.0, %v735_v4  ;;  %v281_v10 = vpop.f32.mrb[9].mxu1  ;;  %558 = vpow2.f32 %v348_v1  ;;  %vm402_vm11 = vcmp.ge.f32.partialorder %v733_v3, 0.0 }
 0x10b   :  { %v366_v11 = vadd.f32 1.0, %v739_v7  ;;  %v314_v12 = vsub.f32 0.0, %v298_v5  ;;  %v322_v13 = vsub.f32 0.0, %v306_v6  ;;  %v743_v14 = vpop.f32.mrb[10].mxu0  ;;  %v745_v15 = vpop.f32.mrb[10].mxu1 }
 0x10c   :  { %v747_v16 = vpop.eup %548  ;;  %560 = vrcp.f32 %v358_v8  ;;  %v299_v17 = vand.u32 2147483647, %v743_v14  ;;  %v307_v18 = vand.u32 2147483647, %v745_v15  ;;  %v252_v19 = vpop.f32.mrb[11].mxu0  ;;  %vm395_vm12 = vcmp.ge.f32.partialorder %v743_v14, 0.0 }
 0x10d   :  { %v751_v20 = vpop.eup %550  ;;  %562 = vrcp.f32 %v366_v11  ;;  %v359_v21 = vadd.f32 1.0, %v747_v16  ;;  %v334_v22 = vmul.f32 1.442695, %v314_v12  ;;  %v284_v23 = vpop.f32.mrb[11].mxu1  ;;  %v350_v25 = vmul.f32 1.442695, %v322_v13 }
 0x10e   :  { %v367_v24 = vadd.f32 1.0, %v751_v20  ;;  %v315_v28 = vsub.f32 0.0, %v299_v17  ;;  %v323_v29 = vsub.f32 0.0, %v307_v18  ;;  %vm403_vm13 = vcmp.ge.f32.partialorder %v745_v15, 0.0 }
 0x10f   :  { %564 = vrcp.f32 %v359_v21 }
 0x110   :  { %566 = vrcp.f32 %v367_v24  ;;  %v336_v30 = vmul.f32 1.442695, %v315_v28  ;;  %v755_v31 = vpop.f32.mrb[12].mxu0  ;;  %v757_v32 = vpop.f32.mrb[12].mxu1  ;;  %v352_v41 = vmul.f32 1.442695, %v323_v29 }
 0x111   :  { %v759_v33 = vpop.eup %552  ;;  %568 = vpow2.f32 %v334_v22  ;;  %v300_v36 = vand.u32 2147483647, %v755_v31  ;;  %v308_v37 = vand.u32 2147483647, %v757_v32  ;;  %v257_v38 = vpop.f32.mrb[13].mxu0  ;;  %vm396_vm14 = vcmp.ge.f32.partialorder %v755_v31, 0.0 }
 0x112   :  { %v763_v39 = vpop.eup %554  ;;  %v360_v40 = vadd.f32 1.0, %v759_v33  ;;  %570 = vpow2.f32 %v350_v25  ;;  %v289_v42 = vpop.f32.mrb[13].mxu1  ;;  %vm404_vm15 = vcmp.ge.f32.partialorder %v757_v32, 0.0 }
 0x113   :  { %v766_v43 = vpop.f32.mrb[14].mxu0  ;;  %v368_v44 = vadd.f32 1.0, %v763_v39  ;;  %572 = vpow2.f32 %v336_v30  ;;  %v316_v45 = vsub.f32 0.0, %v300_v36  ;;  %v324_v48 = vsub.f32 0.0, %v308_v37  ;;  %v769_v49 = vpop.f32.mrb[14].mxu1 }
 0x114   :  { %v260_v50 = vpop.f32.mrb[15].mxu0  ;;  %v771_v51 = vpop.eup %556  ;;  %574 = vrcp.f32 %v360_v40  ;;  %v301_v52 = vand.u32 2147483647, %v766_v43  ;;  %v309_v53 = vand.u32 2147483647, %v769_v49  ;;  %vm397_vm0 = vcmp.ge.f32.partialorder %v766_v43, 0.0 }
 0x115   :  { %v292_v56 = vpop.f32.mrb[15].mxu1  ;;  %v775_v57 = vpop.eup %558  ;;  %576 = vrcp.f32 %v368_v44  ;;  %v361_v58 = vadd.f32 1.0, %v771_v51  ;;  %v338_v59 = vmul.f32 1.442695, %v316_v45  ;;  %v354_v60 = vmul.f32 1.442695, %v324_v48 }
 0x116   :  { %v561_v61 = vpop.eup %560  ;;  %v369_v62 = vadd.f32 1.0, %v775_v57  ;;  %578 = vpow2.f32 %v352_v41  ;;  %v317_v63 = vsub.f32 0.0, %v301_v52  ;;  %v325_v0 = vsub.f32 0.0, %v309_v53 }
 0x117   :  { %v563_v1 = vpop.eup %562  ;;  %v406_v5 = vmul.f32 %v561_v61, %v735_v4  ;;  %580 = vrcp.f32 %v361_v58 }
 0x118   :  { %v414_v6 = vmul.f32 %v563_v1, %v739_v7  ;;  %582 = vrcp.f32 %v369_v62  ;;  %v340_v8 = vmul.f32 1.442695, %v317_v63  ;;  %v356_v9 = vmul.f32 1.442695, %v325_v0 }
 0x119   :  { %v565_v10 = vpop.eup %564  ;;  %v422_v11 = vsel %vm390_vm1, %v561_v61, %v406_v5  ;;  %584 = vpow2.f32 %v338_v59  ;;  %vm405_vm1 = vcmp.ge.f32.partialorder %v769_v49, 0.0 }
 0x11a   :  { %v567_v12 = vpop.eup %566  ;;  %439 = vst.msk [vmem:[%s869_s2] sm:$0xff] %vm438_vm2, %v422_v11  ;;  %v430_v26 = vsel %vm398_vm3, %v563_v1, %v414_v6  ;;  %v407_v4 = vmul.f32 %v565_v10, %v747_v16  ;;  %586 = vpow2.f32 %v354_v60 }
 0x11b   :  { %v569_v13 = vpop.eup %568  ;;  %447 = vst.msk [vmem:[%s869_s2 + $0x40] sm:$0xff] %vm438_vm2, %v430_v26  ;;  %v415_v27 = vmul.f32 %v567_v12, %v751_v20  ;;  %588 = vpow2.f32 %v340_v8 }
 0x11c   :  { %v571_v7 = vpop.eup %570  ;;  %v423_v17 = vsel %vm391_vm4, %v565_v10, %v407_v4  ;;  %v362_v18 = vadd.f32 1.0, %v569_v13  ;;  %590 = vpow2.f32 %v356_v9 }
 0x11d   :  { %v573_v19 = vpop.eup %572  ;;  %440 = vst.msk [vmem:[%s869_s2 + $0x8] sm:$0xff] %vm438_vm2, %v423_v17  ;;  %v431_v16 = vsel %vm399_vm5, %v567_v12, %v415_v27  ;;  %v370_v21 = vadd.f32 1.0, %v571_v7 }
 0x11e   :  { %v575_v22 = vpop.eup %574  ;;  %448 = vst.msk [vmem:[%s869_s2 + $0x48] sm:$0xff] %vm438_vm2, %v431_v16  ;;  %592 = vrcp.f32 %v362_v18  ;;  %v363_v34 = vadd.f32 1.0, %v573_v19 }
 0x11f   :  { %v577_v20 = vpop.eup %576  ;;  %v408_v35 = vmul.f32 %v575_v22, %v759_v33  ;;  %594 = vrcp.f32 %v370_v21 }
 0x120   :  { %v579_v23 = vpop.eup %578  ;;  %v416_v24 = vmul.f32 %v577_v20, %v763_v39  ;;  %596 = vrcp.f32 %v363_v34 }
 0x121   :  { %v581_v25 = vpop.eup %580  ;;  %v424_v28 = vsel %vm392_vm6, %v575_v22, %v408_v35  ;;  %v371_v29 = vadd.f32 1.0, %v579_v23 }
 0x122   :  { %v583_v30 = vpop.eup %582  ;;  %441 = vst.msk [vmem:[%s869_s2 + $0x10] sm:$0xff] %vm438_vm2, %v424_v28  ;;  %v432_v36 = vsel %vm400_vm7, %v577_v20, %v416_v24  ;;  %v409_v33 = vmul.f32 %v581_v25, %v771_v51 }
 0x123   :  { %v585_v37 = vpop.eup %584  ;;  %449 = vst.msk [vmem:[%s869_s2 + $0x50] sm:$0xff] %vm438_vm2, %v432_v36  ;;  %v417_v46 = vmul.f32 %v583_v30, %v775_v57  ;;  %598 = vrcp.f32 %v371_v29 }
 0x124   :  { %v587_v47 = vpop.eup %586  ;;  %v425_v38 = vsel %vm393_vm8, %v581_v25, %v409_v33  ;;  %v364_v39 = vadd.f32 1.0, %v585_v37 }
 0x125   :  { %v589_v40 = vpop.eup %588  ;;  %442 = vst.msk [vmem:[%s869_s2 + $0x18] sm:$0xff] %vm438_vm2, %v425_v38  ;;  %v433_v41 = vsel %vm401_vm9, %v583_v30, %v417_v46  ;;  %v372_v42 = vadd.f32 1.0, %v587_v47 }
 0x126   :  { %v591_v44 = vpop.eup %590  ;;  %450 = vst.msk [vmem:[%s869_s2 + $0x58] sm:$0xff] %vm438_vm2, %v433_v41  ;;  %600 = vrcp.f32 %v364_v39  ;;  %v365_v54 = vadd.f32 1.0, %v589_v40 }
 0x127   :  { %602 = vrcp.f32 %v372_v42  ;;  %v373_v45 = vadd.f32 1.0, %v591_v44 }
 0x128   :  { %v593_v55 = vpop.eup %592  ;;  %604 = vrcp.f32 %v365_v54 }
 0x129   :  { %v595_v48 = vpop.eup %594  ;;  %v410_v50 = vmul.f32 %v593_v55, %v569_v13  ;;  %606 = vrcp.f32 %v373_v45 }
 0x12a   :  { %v597_v51 = vpop.eup %596  ;;  %v418_v52 = vmul.f32 %v595_v48, %v571_v7 }
 0x12b   :  { %v426_v53 = vsel %vm394_vm10, %v593_v55, %v410_v50  ;;  %v411_v56 = vmul.f32 %v597_v51, %v573_v19 }
 0x12c   :  { %443 = vst.msk [vmem:[%s869_s2 + $0x20] sm:$0xff] %vm438_vm2, %v426_v53  ;;  %v434_v57 = vsel %vm402_vm11, %v595_v48, %v418_v52 }
 0x12d   :  { %v599_v58 = vpop.eup %598  ;;  %451 = vst.msk [vmem:[%s869_s2 + $0x60] sm:$0xff] %vm438_vm2, %v434_v57  ;;  %v427_v2 = vsel %vm395_vm12, %v597_v51, %v411_v56 }
 0x12e   :  { %444 = vst.msk [vmem:[%s869_s2 + $0x28] sm:$0xff] %vm438_vm2, %v427_v2  ;;  %v419_v3 = vmul.f32 %v599_v58, %v579_v23 }
 0x130   :  { %v601_v59 = vpop.eup %600  ;;  %v435_v60 = vsel %vm403_vm13, %v599_v58, %v419_v3 }
 0x131   :  { %v603_v61 = vpop.eup %602  ;;  %452 = vst.msk [vmem:[%s869_s2 + $0x68] sm:$0xff] %vm438_vm2, %v435_v60  ;;  %v412_v14 = vmul.f32 %v601_v59, %v585_v37 }
 0x132   :  { %v605_v62 = vpop.eup %604  ;;  %v420_v63 = vmul.f32 %v603_v61, %v587_v47 }
 0x133   :  { %v607_v0 = vpop.eup %606  ;;  %v428_v1 = vsel %vm396_vm14, %v601_v59, %v412_v14  ;;  %v413_v5 = vmul.f32 %v605_v62, %v589_v40 }
 0x134   :  { %445 = vst.msk [vmem:[%s869_s2 + $0x30] sm:$0xff] %vm438_vm2, %v428_v1  ;;  %v436_v15 = vsel %vm404_vm15, %v603_v61, %v420_v63  ;;  %v421_v6 = vmul.f32 %v607_v0, %v591_v44 }
 0x135   :  { %453 = vst.msk [vmem:[%s869_s2 + $0x70] sm:$0xff] %vm438_vm2, %v436_v15  ;;  %v429_v31 = vsel %vm397_vm0, %v605_v62, %v413_v5 }
 0x136   :  { %446 = vst.msk [vmem:[%s869_s2 + $0x38] sm:$0xff] %vm438_vm2, %v429_v31  ;;  %v437_v32 = vsel %vm405_vm1, %v607_v0, %v421_v6 }
 0x137   :  { %454 = vst.msk [vmem:[%s869_s2 + $0x78] sm:$0xff] %vm438_vm2, %v437_v32 }

</bundles_post_ra>
